<compile_context>
chip_gen: v5e
topology: v5e:2x2
jax: 0.10.0
libtpu: 0.0.40
codegen_flags: <defaults>
</compile_context>

<pallas_src>
import functools

import jax
import jax.numpy as jnp
from jax.experimental import pallas as pl
from jax.experimental.pallas import tpu as pltpu

KSIZE = 4
STRIDE = 2
PAD = 1
BN_EPS = 1e-5

TM = 512   # rows  (N*OH*OW), multiple of 16 (bf16 sublane quantum)
TN = 512   # cols  (Cout),    multiple of 128 -> tn == Npad for all layers here
TK = 512   # depth (Cin*K*K) chunk streamed per k step

# ConvTranspose2d(k=4,s=2,p=1) phase decomposition: output row parity py uses input rows
# {m-1, m} with taps ky=(3,1) for py=0 and rows {m, m+1} with taps ky=(2,0) for py=1.
_PHASES = ((0, 0), (0, 1), (1, 0), (1, 1))
_PHASE_TAPS = {0: (3, 1), 1: (2, 0)}


def _round_up(x, m):
    return ((x + m - 1) // m) * m


def _pad_and_tile(dim, target, quantum):
    """Return (padded_dim, tile) with tile | padded_dim and tile % quantum == 0."""
    d = _round_up(dim, quantum)
    if d <= target:
        return d, d
    return _round_up(dim, target), target


def _apply_act(z, act):
    if act == "relu":
        return jnp.maximum(z, 0.0)
    if act == "leaky":
        return jnp.where(z > 0, z, 0.2 * z)
    if act == "tanh":
        return jnp.tanh(z)
    return z  # "none"


# --------------------------------------------------------------------------
# Pallas kernels
# --------------------------------------------------------------------------
def _mm_kernel(a_ref, b_ref, bias_ref, *refs, post_acts, compute_stats, tk):
    """Tiled matmul with VMEM-resident weight.

    acc += a_tile @ b[k*tk : (k+1)*tk, :] over the k axis.  On the last k step: add bias,
    optionally emit per-tile per-channel (sum, sumsq) partials (fused BatchNorm stats of the
    *pre-activation* output), then write one output per requested post-activation.
    refs = (*y_refs, [stats_ref,] acc_scratch).
    """
    acc_ref = refs[-1]
    if compute_stats:
        y_refs, stats_ref = refs[:-2], refs[-2]
    else:
        y_refs, stats_ref = refs[:-1], None

    k = pl.program_id(2)

    @pl.when(k == 0)
    def _init():
        acc_ref[...] = jnp.zeros_like(acc_ref)

    start = pl.multiple_of(k * tk, tk)
    acc_ref[...] += jnp.dot(a_ref[...], b_ref[pl.ds(start, tk), :],
                            preferred_element_type=jnp.float32)

    @pl.when(k == pl.num_programs(2) - 1)
    def _finish():
        y = acc_ref[...] + bias_ref[...]
        if compute_stats:
            # Stats of the pre-activation output (BN'd layers have bias=0 and no fused
            # post-activation).  Zero-padded rows/channels contribute zeros; the real-count
            # divisor is applied in JAX.
            s = jnp.sum(y, axis=0, keepdims=True)
            sq = jnp.sum(y * y, axis=0, keepdims=True)
            rows = jax.lax.broadcasted_iota(jnp.int32, stats_ref.shape, 0)
            stats_ref[...] = jnp.where(rows == 0, s, jnp.where(rows == 1, sq, 0.0))
        for y_ref, act in zip(y_refs, post_acts):
            y_ref[...] = _apply_act(y, act).astype(y_ref.dtype)


def _affine_act_kernel(y_ref, scale_ref, shift_ref, *o_refs, acts):
    """BatchNorm application (per-channel scale/shift) + one output per activation."""
    z = y_ref[...].astype(jnp.float32) * scale_ref[...] + shift_ref[...]
    for o_ref, act in zip(o_refs, acts):
        o_ref[...] = _apply_act(z, act).astype(o_ref.dtype)


# --------------------------------------------------------------------------
# Pallas call wrappers
# --------------------------------------------------------------------------
def _fused_matmul(a, wmat, bias, tk, tn, post_acts=("none",),
                  compute_stats=False, out_dtype=jnp.bfloat16):
    """y_i = act_i(a @ wmat + bias), optional per-M-tile channel (sum, sumsq) stats.

    a:    (M, Kpad) bf16 (K already zero-padded by the patch gather).
    wmat: (Kpad, Npad) bf16, VMEM-resident inside the kernel.
    bias: (1, Npad) f32 (zeros when the layer has no bias).
    Returns (list of y_padded (Mpad, Npad), stats (Mt*8, Npad) or None).
    """
    M, Kpad = a.shape
    Npad = wmat.shape[1]
    Mpad, tm = _pad_and_tile(M, TM, 16)
    if Mpad != M:
        a = jnp.pad(a, ((0, Mpad - M), (0, 0)))
    grid = (Mpad // tm, Npad // tn, Kpad // tk)
    n_y = len(post_acts)

    out_shape = tuple(jax.ShapeDtypeStruct((Mpad, Npad), out_dtype) for _ in range(n_y))
    out_specs = tuple(pl.BlockSpec((tm, tn), lambda i, j, k: (i, j)) for _ in range(n_y))
    if compute_stats:
        out_shape = out_shape + (jax.ShapeDtypeStruct((grid[0] * 8, Npad), jnp.float32),)
        out_specs = out_specs + (pl.BlockSpec((8, tn), lambda i, j, k: (i, j)),)

    out_isz = jnp.dtype(out_dtype).itemsize
    cost = pl.CostEstimate(
        flops=2 * Mpad * Npad * Kpad,
        transcendentals=Mpad * Npad if "tanh" in post_acts else 0,
        bytes_accessed=Mpad * Kpad * 2 + Kpad * Npad * 2 + n_y * Mpad * Npad * out_isz)

    kernel = functools.partial(_mm_kernel, post_acts=post_acts,
                               compute_stats=compute_stats, tk=tk)
    outs = pl.pallas_call(
        kernel,
        out_shape=out_shape,
        grid=grid,
        in_specs=[pl.BlockSpec((tm, tk), lambda i, j, k: (i, k)),
                  # Full-K weight block, constant index across i/k -> DMA'd once per j.
                  pl.BlockSpec((Kpad, tn), lambda i, j, k: (0, j)),
                  pl.BlockSpec((1, tn), lambda i, j, k: (0, j))],
        out_specs=out_specs,
        scratch_shapes=[pltpu.VMEM((tm, tn), jnp.float32)],
        compiler_params=pltpu.CompilerParams(
            dimension_semantics=("parallel", "parallel", "arbitrary"),
            vmem_limit_bytes=32 * 1024 * 1024),
        cost_estimate=cost,
    )(a, wmat, bias)
    if compute_stats:
        return list(outs[:-1]), outs[-1]
    return list(outs), None


def _affine_act(y_pad, scale, shift, acts, out_dtype=jnp.bfloat16):
    """outs[i] = acts[i](y * scale + shift); y read once, multiple activated outputs."""
    Mpad, Npad = y_pad.shape
    tm = Mpad if Mpad <= TM else TM          # Mpad is <= TM or a multiple of TM
    kernel = functools.partial(_affine_act_kernel, acts=acts)
    out_shape = tuple(jax.ShapeDtypeStruct((Mpad, Npad), out_dtype) for _ in acts)
    out_specs = tuple(pl.BlockSpec((tm, Npad), lambda i: (i, 0)) for _ in acts)
    return pl.pallas_call(
        kernel,
        out_shape=out_shape,
        grid=(Mpad // tm,),
        in_specs=[pl.BlockSpec((tm, Npad), lambda i: (i, 0)),
                  pl.BlockSpec((1, Npad), lambda i: (0, 0)),
                  pl.BlockSpec((1, Npad), lambda i: (0, 0))],
        out_specs=out_specs,
        compiler_params=pltpu.CompilerParams(
            dimension_semantics=("parallel",)),
    )(y_pad, scale, shift)


def _bn_scale_shift(stats_list, count, gamma, beta, Npad):
    """Fold batch statistics into per-channel scale/shift (f32, tiny arrays)."""
    s = jnp.zeros((Npad,), jnp.float32)
    sq = jnp.zeros((Npad,), jnp.float32)
    for st in stats_list:
        st = st.reshape(-1, 8, Npad)
        s = s + jnp.sum(st[:, 0, :], axis=0)
        sq = sq + jnp.sum(st[:, 1, :], axis=0)
    mean = s / count
    # Single-pass biased variance (matches PyTorch normalization); clamped for safety.
    var = jnp.maximum(sq / count - mean * mean, 0.0)
    c = gamma.shape[0]
    g = jnp.zeros((Npad,), jnp.float32).at[:c].set(gamma.astype(jnp.float32))
    b = jnp.zeros((Npad,), jnp.float32).at[:c].set(beta.astype(jnp.float32))
    scale = g * jax.lax.rsqrt(var + BN_EPS)
    shift = b - mean * scale
    return scale.reshape(1, Npad), shift.reshape(1, Npad)


# --------------------------------------------------------------------------
# Patch building / weight prep (pure data movement; NHWC, bf16, K pre-padded)
# --------------------------------------------------------------------------
# TODO(synk): the im2col / phase tap gather is still materialized by XLA in HBM; moving it
# in-kernel (manual halo DMA) is the remaining big HBM-traffic lever and is left out here.
def _im2col_s2(x, Kpad):
    """(kh, kw, ci)-ordered, K-padded bf16 patches for a stride-2, k=4, pad=1 conv."""
    N, H, W, C = x.shape
    xp = jnp.pad(x, ((0, 0), (PAD, PAD), (PAD, PAD), (0, 0)))
    OH = (H + 2 * PAD - KSIZE) // STRIDE + 1
    OW = (W + 2 * PAD - KSIZE) // STRIDE + 1
    cols = []
    for kh in range(KSIZE):
        for kw in range(KSIZE):
            cols.append(xp[:, kh:kh + STRIDE * OH:STRIDE,
                           kw:kw + STRIDE * OW:STRIDE, :])
    kdim = KSIZE * KSIZE * C
    if Kpad > kdim:
        cols.append(jnp.zeros((N, OH, OW, Kpad - kdim), x.dtype))
    patches = jnp.concatenate(cols, axis=-1)
    return patches.reshape(N * OH * OW, Kpad), (N, OH, OW)


def _convT_phase_patches(xs, py, px, Kpad):
    """(dy, dx, ci)-ordered, K-padded bf16 2x2 patches for output phase (py, px) of a
    stride-2, k=4, pad=1 transposed conv.  `xs` is the list of input tensors in the skip
    concat order (the activation-level concat is never materialized)."""
    N, IH, IW, _ = xs[0].shape
    xps = [jnp.pad(x, ((0, 0), (1, 1), (1, 1), (0, 0))) for x in xs]
    cols = []
    for dy in (0, 1):
        for dx in (0, 1):
            for xp in xps:
                cols.append(xp[:, py + dy:py + dy + IH, px + dx:px + dx + IW, :])
    kdim = 4 * sum(x.shape[-1] for x in xs)
    if Kpad > kdim:
        cols.append(jnp.zeros((N, IH, IW, Kpad - kdim), xs[0].dtype))
    patches = jnp.concatenate(cols, axis=-1)
    return patches.reshape(N * IH * IW, Kpad)


def _interleave_phases(p, N, IH, IW, C):
    """p = [p00, p01, p10, p11] of shape (N, IH, IW, C) -> (N, 2*IH, 2*IW, C)."""
    top = jnp.stack([p[0], p[1]], axis=3)
    bot = jnp.stack([p[2], p[3]], axis=3)
    y = jnp.stack([top, bot], axis=2)          # (N, IH, 2, IW, 2, C)
    return y.reshape(N, 2 * IH, 2 * IW, C)


def _prep_conv(weight, bias=None):
    """nn.Conv2d weight (Cout, Cin, K, K) -> padded bf16 (Kpad, Npad) matmul operand."""
    Cout, Cin, K, _ = weight.shape
    kdim = Cin * K * K
    Kpad, tk = _pad_and_tile(kdim, TK, 128)
    Npad, tn = _pad_and_tile(Cout, TN, 128)
    wmat = jnp.transpose(weight, (2, 3, 1, 0)).reshape(kdim, Cout)   # rows (kh,kw,ci)
    wmat = jnp.pad(wmat, ((0, Kpad - kdim), (0, Npad - Cout))).astype(jnp.bfloat16)
    b = jnp.zeros((1, Npad), jnp.float32)
    if bias is not None:
        b = b.at[0, :Cout].set(bias.astype(jnp.float32))
    return dict(w=wmat, b=b, cout=Cout, tk=tk, tn=tn, Kpad=Kpad, Npad=Npad)


def _prep_convT(weight, bias=None):
    """nn.ConvTranspose2d weight (Cin, Cout, K, K) -> 4 padded bf16 phase operands."""
    Cin, Cout, K, _ = weight.shape
    kdim = 4 * Cin
    Kpad, tk = _pad_and_tile(kdim, TK, 128)
    Npad, tn = _pad_and_tile(Cout, TN, 128)
    mats = []
    for py, px in _PHASES:
        taps = []
        for dy in (0, 1):
            for dx in (0, 1):
                ky = _PHASE_TAPS[py][dy]
                kx = _PHASE_TAPS[px][dx]
                taps.append(weight[:, :, ky, kx])                 # (Cin, Cout)
        wp = jnp.stack(taps, axis=0).reshape(kdim, Cout)          # rows (dy,dx,ci)
        wp = jnp.pad(wp, ((0, Kpad - kdim), (0, Npad - Cout))).astype(jnp.bfloat16)
        mats.append(wp)
    b = jnp.zeros((1, Npad), jnp.float32)
    if bias is not None:
        b = b.at[0, :Cout].set(bias.astype(jnp.float32))
    return dict(w=mats, b=b, cout=Cout, tk=tk, tn=tn, Kpad=Kpad, Npad=Npad)


# --------------------------------------------------------------------------
# Layer helpers
# --------------------------------------------------------------------------
def _conv_plain(x, pw, post_acts=("none",), out_dtype=jnp.bfloat16):
    """Conv2d (no norm); one fused output per requested post-activation; no stats."""
    patches, (N, OH, OW) = _im2col_s2(x, pw["Kpad"])
    y_list, _ = _fused_matmul(patches, pw["w"], pw["b"], pw["tk"], pw["tn"],
                              post_acts=post_acts, compute_stats=False,
                              out_dtype=out_dtype)
    M = N * OH * OW
    return tuple(y[:M, :pw["cout"]].reshape(N, OH, OW, pw["cout"]) for y in y_list)


def _conv_bn(x, pw, gamma, beta, acts):
    """Conv2d (bias=False) + BatchNorm2d (batch stats fused in the matmul epilogue);
    one affine pass produces all requested activated copies."""
    patches, (N, OH, OW) = _im2col_s2(x, pw["Kpad"])
    (y,), stats = _fused_matmul(patches, pw["w"], pw["b"], pw["tk"], pw["tn"],
                                post_acts=("none",), compute_stats=True,
                                out_dtype=jnp.bfloat16)
    M = N * OH * OW
    scale, shift = _bn_scale_shift([stats], M, gamma, beta, pw["Npad"])
    outs = _affine_act(y, scale, shift, acts, jnp.bfloat16)
    return tuple(o[:M, :pw["cout"]].reshape(N, OH, OW, pw["cout"]) for o in outs)


def _convT_bn_relu(xs, pw, gamma, beta):
    """ConvTranspose2d (bias=False) + BatchNorm2d + the parent block's ReLU,
    phase-decomposed (4 sub-pixel matmuls, BN stats combined across phases).
    `xs` lists the skip-concat inputs (the concat itself is folded into the tap gather)."""
    N, IH, IW, _ = xs[0].shape
    M = N * IH * IW
    ys, stats = [], []
    for idx, (py, px) in enumerate(_PHASES):
        patches = _convT_phase_patches(xs, py, px, pw["Kpad"])
        (yp,), st = _fused_matmul(patches, pw["w"][idx], pw["b"], pw["tk"], pw["tn"],
                                  post_acts=("none",), compute_stats=True,
                                  out_dtype=jnp.bfloat16)
        ys.append(yp)
        stats.append(st)
    scale, shift = _bn_scale_shift(stats, 4 * M, gamma, beta, pw["Npad"])
    phases = []
    for yp in ys:
        (z,) = _affine_act(yp, scale, shift, ("relu",), jnp.bfloat16)
        phases.append(z[:M, :pw["cout"]].reshape(N, IH, IW, pw["cout"]))
    return _interleave_phases(phases, N, IH, IW, pw["cout"])


def _convT_tanh(xs, pw):
    """Outermost ConvTranspose2d (with bias) + Tanh, phase-decomposed; no stats."""
    N, IH, IW, _ = xs[0].shape
    M = N * IH * IW
    phases = []
    for idx, (py, px) in enumerate(_PHASES):
        patches = _convT_phase_patches(xs, py, px, pw["Kpad"])
        (yp,), _ = _fused_matmul(patches, pw["w"][idx], pw["b"], pw["tk"], pw["tn"],
                                 post_acts=("tanh",), compute_stats=False,
                                 out_dtype=jnp.float32)
        phases.append(yp[:M, :pw["cout"]].reshape(N, IH, IW, pw["cout"]))
    return _interleave_phases(phases, N, IH, IW, pw["cout"])


# --------------------------------------------------------------------------
# UNet generator (num_downsamples=5 -> 4 nested skip blocks, norm=BatchNorm2d)
# --------------------------------------------------------------------------
def init_params(key, nf):
    ks = jax.random.split(key, 20)
    w = lambda k, s: 0.05 * jax.random.normal(k, s, jnp.float32)
    g = lambda k, c: 1.0 + 0.1 * jax.random.normal(k, (c,), jnp.float32)
    b = lambda k, c: 0.1 * jax.random.normal(k, (c,), jnp.float32)
    p = {}
    # outermost (outer_nf=nf, inner_nf=2nf); BatchNorm -> conv bias=False
    p["oc_down_w"] = w(ks[0], (2 * nf, nf, KSIZE, KSIZE))
    p["oc_up_w"] = w(ks[1], (4 * nf, nf, KSIZE, KSIZE))      # ConvT(in=2*inner, out=nf)
    p["oc_up_b"] = b(ks[2], nf)                              # outermost upconv has bias
    # block2 (outer_nf=2nf, inner_nf=4nf)
    p["b2_down_w"] = w(ks[3], (4 * nf, 2 * nf, KSIZE, KSIZE))
    p["b2_dn_g"], p["b2_dn_b"] = g(ks[4], 4 * nf), b(ks[5], 4 * nf)
    p["b2_up_w"] = w(ks[6], (8 * nf, 2 * nf, KSIZE, KSIZE))
    p["b2_up_g"], p["b2_up_b"] = g(ks[7], 2 * nf), b(ks[8], 2 * nf)
    # block3 (outer_nf=4nf, inner_nf=8nf)
    p["b3_down_w"] = w(ks[9], (8 * nf, 4 * nf, KSIZE, KSIZE))
    p["b3_dn_g"], p["b3_dn_b"] = g(ks[10], 8 * nf), b(ks[11], 8 * nf)
    p["b3_up_w"] = w(ks[12], (16 * nf, 4 * nf, KSIZE, KSIZE))
    p["b3_up_g"], p["b3_up_b"] = g(ks[13], 4 * nf), b(ks[14], 4 * nf)
    # innermost (outer_nf=8nf, inner_nf=8nf)
    p["in_down_w"] = w(ks[15], (8 * nf, 8 * nf, KSIZE, KSIZE))
    p["in_up_w"] = w(ks[16], (8 * nf, 8 * nf, KSIZE, KSIZE))
    p["in_up_g"], p["in_up_b"] = g(ks[17], 8 * nf), b(ks[18], 8 * nf)
    return p


def prepare_params(p):
    """One-time weight prep: im2col matrices, 128-padded lane-dense channels, bf16 cast,
    ConvTranspose phase decomposition."""
    return {
        "ocd": _prep_conv(p["oc_down_w"]),
        "b2d": _prep_conv(p["b2_down_w"]),
        "b3d": _prep_conv(p["b3_down_w"]),
        "ind": _prep_conv(p["in_down_w"]),
        "inu": _prep_convT(p["in_up_w"]),
        "b3u": _prep_convT(p["b3_up_w"]),
        "b2u": _prep_convT(p["b2_up_w"]),
        "ocu": _prep_convT(p["oc_up_w"], p["oc_up_b"]),
    }


def unet_generator_forward(x_nchw, p, prep):
    x = jnp.transpose(x_nchw, (0, 2, 3, 1)).astype(jnp.bfloat16)   # NHWC bf16 end-to-end
    # ---- down path ----
    # Outermost bare downconv; emit both the LeakyReLU copy (next downconv input) and the
    # ReLU copy (outermost uprelu of the skip concat) directly from the matmul epilogue.
    d1_lk, d1_rl = _conv_plain(x, prep["ocd"], post_acts=("leaky", "relu"))
    d2_lk, d2_rl = _conv_bn(d1_lk, prep["b2d"], p["b2_dn_g"], p["b2_dn_b"],
                            acts=("leaky", "relu"))
    d3_lk, d3_rl = _conv_bn(d2_lk, prep["b3d"], p["b3_dn_g"], p["b3_dn_b"],
                            acts=("leaky", "relu"))
    (d4_rl,) = _conv_plain(d3_lk, prep["ind"], post_acts=("relu",))   # innermost (no norm)
    # ---- up path; skip concats are folded into the phase-tap gather ----
    u4_rl = _convT_bn_relu([d4_rl], prep["inu"], p["in_up_g"], p["in_up_b"])
    u3_rl = _convT_bn_relu([d3_rl, u4_rl], prep["b3u"], p["b3_up_g"], p["b3_up_b"])
    u2_rl = _convT_bn_relu([d2_rl, u3_rl], prep["b2u"], p["b2_up_g"], p["b2_up_b"])
    out = _convT_tanh([d1_rl, u2_rl], prep["ocu"])
    return jnp.transpose(out, (0, 3, 1, 2))                 # back to NCHW


if __name__ == "__main__":
    key = jax.random.PRNGKey(0)
    kx, kp = jax.random.split(key)
    nf = 4                 # num_filters
    N, H, W = 2, 16, 16
    # Input channels == num_filters (module's input_num_channels quirk, see header note).
    x = jax.random.normal(kx, (N, nf, H, W), jnp.float32)
    params = init_params(kp, nf)
    prep = prepare_params(params)

    fwd = jax.jit(lambda xin: unet_generator_forward(xin, params, prep))
    y = fwd(x)
    y = jax.block_until_ready(y)
    assert y.shape == (N, nf, H, W), y.shape
    assert bool(jnp.all(jnp.isfinite(y)))
    assert bool(jnp.all(jnp.abs(y) <= 1.0 + 1e-3))   # Tanh output range
    print("KERNEL_OK")
</pallas_src>

<mosaic_0001>
module attributes {stable_mosaic.version = 11 : i64} {
  func.func @_mm_kernel(%arg0: i32, %arg1: i32, %arg2: i32, %arg3: memref<128x128xbf16, #tpu.memory_space<vmem>>, %arg4: memref<128x128xbf16, #tpu.memory_space<vmem>>, %arg5: memref<1x128xf32, #tpu.memory_space<vmem>>, %arg6: memref<128x128xbf16, #tpu.memory_space<vmem>>, %arg7: memref<128x128xbf16, #tpu.memory_space<vmem>>, %arg8: memref<128x128xf32, #tpu.memory_space<vmem>>) attributes {dimension_semantics = [#tpu.dimension_semantics<parallel>, #tpu.dimension_semantics<parallel>, #tpu.dimension_semantics<arbitrary>], iteration_bounds = array<i64: 1, 1, 1>, scalar_prefetch = 0 : i64, scratch_operands = 1 : i64, tpu.core_type = #tpu.core_type<tc>, window_params = [{transform_indices = @transform_0, window_bounds = array<i64: 128, 128>}, {transform_indices = @transform_1, window_bounds = array<i64: 128, 128>}, {transform_indices = @transform_2, window_bounds = array<i64: 1, 128>}, {transform_indices = @transform_3, window_bounds = array<i64: 128, 128>}, {transform_indices = @transform_4, window_bounds = array<i64: 128, 128>}]} {
    %c0_i32 = arith.constant 0 : i32
    %0 = arith.cmpi eq, %arg2, %c0_i32 : i32
    %1 = arith.extui %0 : i1 to i32
    %c0_i32_0 = arith.constant 0 : i32
    %2 = arith.cmpi ne, %1, %c0_i32_0 : i32
    scf.if %2 {
      %cst_9 = arith.constant 0.000000e+00 : f32
      %15 = vector.broadcast %cst_9 : f32 to vector<128x128xf32>
      %c0_10 = arith.constant 0 : index
      %c0_11 = arith.constant 0 : index
      %16 = vector.load %arg8[%c0_10, %c0_11] : memref<128x128xf32, #tpu.memory_space<vmem>>, vector<128x128xf32>
      tpu.vector_store %arg8[%c0_10, %c0_11], %15 {strides = array<i32>} : memref<128x128xf32, #tpu.memory_space<vmem>>, vector<128x128xf32>,
    } else {
    }
    %c128_i32 = arith.constant 128 : i32
    %3 = arith.muli %arg2, %c128_i32 : i32
    %4 = tpu.assume_multiple %3, 128 : i32
    %c0 = arith.constant 0 : index
    %c0_1 = arith.constant 0 : index
    %5 = vector.load %arg8[%c0, %c0_1] : memref<128x128xf32, #tpu.memory_space<vmem>>, vector<128x128xf32>
    %c0_2 = arith.constant 0 : index
    %c0_3 = arith.constant 0 : index
    %6 = vector.load %arg3[%c0_2, %c0_3] : memref<128x128xbf16, #tpu.memory_space<vmem>>, vector<128x128xbf16>
    %7 = arith.index_cast %4 : i32 to index
    %c0_4 = arith.constant 0 : index
    %8 = vector.load %arg4[%7, %c0_4] : memref<128x128xbf16, #tpu.memory_space<vmem>>, vector<128x128xbf16>
    %cst = arith.constant dense<0.000000e+00> : vector<128x128xf32>
    %9 = tpu.matmul %6, %8, %cst {dimension_numbers = #tpu.dot_dimension_numbers<[1], [0], [0], [1], [0, 0, 1, 1], [], []>} : vector<128x128xbf16>, vector<128x128xbf16>, vector<128x128xf32> -> vector<128x128xf32>
    %10 = arith.addf %5, %9 : vector<128x128xf32>
    %c0_5 = arith.constant 0 : index
    %c0_6 = arith.constant 0 : index
    %11 = vector.load %arg8[%c0_5, %c0_6] : memref<128x128xf32, #tpu.memory_space<vmem>>, vector<128x128xf32>
    tpu.vector_store %arg8[%c0_5, %c0_6], %10 {strides = array<i32>} : memref<128x128xf32, #tpu.memory_space<vmem>>, vector<128x128xf32>,
    %c0_i32_7 = arith.constant 0 : i32
    %12 = arith.cmpi eq, %arg2, %c0_i32_7 : i32
    %13 = arith.extui %12 : i1 to i32
    %c0_i32_8 = arith.constant 0 : i32
    %14 = arith.cmpi ne, %13, %c0_i32_8 : i32
    scf.if %14 {
      %c0_9 = arith.constant 0 : index
      %c0_10 = arith.constant 0 : index
      %15 = vector.load %arg8[%c0_9, %c0_10] : memref<128x128xf32, #tpu.memory_space<vmem>>, vector<128x128xf32>
      %c0_11 = arith.constant 0 : index
      %c0_12 = arith.constant 0 : index
      %16 = vector.load %arg5[%c0_11, %c0_12] : memref<1x128xf32, #tpu.memory_space<vmem>>, vector<1x128xf32>
      %17 = vector.broadcast %16 : vector<1x128xf32> to vector<128x128xf32>
      %18 = arith.addf %15, %17 : vector<128x128xf32>
      %cst_13 = arith.constant 0.000000e+00 : f32
      %19 = vector.broadcast %cst_13 : f32 to vector<128x128xf32>
      %20 = arith.cmpf ogt, %18, %19 : vector<128x128xf32>
      %cst_14 = arith.constant 2.000000e-01 : f32
      %21 = vector.broadcast %cst_14 : f32 to vector<128x128xf32>
      %22 = arith.mulf %21, %18 : vector<128x128xf32>
      %23 = arith.select %20, %18, %22 : vector<128x128xi1>, vector<128x128xf32>
      %24 = arith.truncf %23 : vector<128x128xf32> to vector<128x128xbf16>
      %c0_15 = arith.constant 0 : index
      %c0_16 = arith.constant 0 : index
      %25 = vector.load %arg6[%c0_15, %c0_16] : memref<128x128xbf16, #tpu.memory_space<vmem>>, vector<128x128xbf16>
      tpu.vector_store %arg6[%c0_15, %c0_16], %24 {strides = array<i32>} : memref<128x128xbf16, #tpu.memory_space<vmem>>, vector<128x128xbf16>,
      %cst_17 = arith.constant 0.000000e+00 : f32
      %26 = vector.broadcast %cst_17 : f32 to vector<128x128xf32>
      %27 = arith.maximumf %18, %26 : vector<128x128xf32>
      %28 = arith.truncf %27 : vector<128x128xf32> to vector<128x128xbf16>
      %c0_18 = arith.constant 0 : index
      %c0_19 = arith.constant 0 : index
      %29 = vector.load %arg7[%c0_18, %c0_19] : memref<128x128xbf16, #tpu.memory_space<vmem>>, vector<128x128xbf16>
      tpu.vector_store %arg7[%c0_18, %c0_19], %28 {strides = array<i32>} : memref<128x128xbf16, #tpu.memory_space<vmem>>, vector<128x128xbf16>,
    } else {
    }
    return
  }
  func.func @transform_0(%arg0: i32, %arg1: i32, %arg2: i32) -> (i32, i32) {
    %c0_i32 = arith.constant 0 : i32
    return %arg0, %arg2 : i32, i32
  }
  func.func @transform_1(%arg0: i32, %arg1: i32, %arg2: i32) -> (i32, i32) {
    %c0_i32 = arith.constant 0 : i32
    %c0_i32_0 = arith.constant 0 : i32
    return %c0_i32, %arg1 : i32, i32
  }
  func.func @transform_2(%arg0: i32, %arg1: i32, %arg2: i32) -> (i32, i32) {
    %c0_i32 = arith.constant 0 : i32
    %c0_i32_0 = arith.constant 0 : i32
    return %c0_i32, %arg1 : i32, i32
  }
  func.func @transform_3(%arg0: i32, %arg1: i32, %arg2: i32) -> (i32, i32) {
    %c0_i32 = arith.constant 0 : i32
    return %arg0, %arg1 : i32, i32
  }
  func.func @transform_4(%arg0: i32, %arg1: i32, %arg2: i32) -> (i32, i32) {
    %c0_i32 = arith.constant 0 : i32
    return %arg0, %arg1 : i32, i32
  }
}

module attributes {stable_mosaic.version = 11 : i64} {
  func.func @_mm_kernel(%arg0: i32, %arg1: i32, %arg2: i32, %arg3: memref<32x128xbf16, #tpu.memory_space<vmem>>, %arg4: memref<128x128xbf16, #tpu.memory_space<vmem>>, %arg5: memref<1x128xf32, #tpu.memory_space<vmem>>, %arg6: memref<32x128xbf16, #tpu.memory_space<vmem>>, %arg7: memref<8x128xf32, #tpu.memory_space<vmem>>, %arg8: memref<32x128xf32, #tpu.memory_space<vmem>>) attributes {dimension_semantics = [#tpu.dimension_semantics<parallel>, #tpu.dimension_semantics<parallel>, #tpu.dimension_semantics<arbitrary>], iteration_bounds = array<i64: 1, 1, 1>, scalar_prefetch = 0 : i64, scratch_operands = 1 : i64, tpu.core_type = #tpu.core_type<tc>, window_params = [{transform_indices = @transform_0, window_bounds = array<i64: 32, 128>}, {transform_indices = @transform_1, window_bounds = array<i64: 128, 128>}, {transform_indices = @transform_2, window_bounds = array<i64: 1, 128>}, {transform_indices = @transform_3, window_bounds = array<i64: 32, 128>}, {transform_indices = @transform_4, window_bounds = array<i64: 8, 128>}]} {
    %c0_i32 = arith.constant 0 : i32
    %0 = arith.cmpi eq, %arg2, %c0_i32 : i32
    %1 = arith.extui %0 : i1 to i32
    %c0_i32_0 = arith.constant 0 : i32
    %2 = arith.cmpi ne, %1, %c0_i32_0 : i32
    scf.if %2 {
      %cst_9 = arith.constant 0.000000e+00 : f32
      %15 = vector.broadcast %cst_9 : f32 to vector<32x128xf32>
      %c0_10 = arith.constant 0 : index
      %c0_11 = arith.constant 0 : index
      %16 = vector.load %arg8[%c0_10, %c0_11] : memref<32x128xf32, #tpu.memory_space<vmem>>, vector<32x128xf32>
      tpu.vector_store %arg8[%c0_10, %c0_11], %15 {strides = array<i32>} : memref<32x128xf32, #tpu.memory_space<vmem>>, vector<32x128xf32>,
    } else {
    }
    %c128_i32 = arith.constant 128 : i32
    %3 = arith.muli %arg2, %c128_i32 : i32
    %4 = tpu.assume_multiple %3, 128 : i32
    %c0 = arith.constant 0 : index
    %c0_1 = arith.constant 0 : index
    %5 = vector.load %arg8[%c0, %c0_1] : memref<32x128xf32, #tpu.memory_space<vmem>>, vector<32x128xf32>
    %c0_2 = arith.constant 0 : index
    %c0_3 = arith.constant 0 : index
    %6 = vector.load %arg3[%c0_2, %c0_3] : memref<32x128xbf16, #tpu.memory_space<vmem>>, vector<32x128xbf16>
    %7 = arith.index_cast %4 : i32 to index
    %c0_4 = arith.constant 0 : index
    %8 = vector.load %arg4[%7, %c0_4] : memref<128x128xbf16, #tpu.memory_space<vmem>>, vector<128x128xbf16>
    %cst = arith.constant dense<0.000000e+00> : vector<32x128xf32>
    %9 = tpu.matmul %6, %8, %cst {dimension_numbers = #tpu.dot_dimension_numbers<[1], [0], [0], [1], [0, 0, 1, 1], [], []>} : vector<32x128xbf16>, vector<128x128xbf16>, vector<32x128xf32> -> vector<32x128xf32>
    %10 = arith.addf %5, %9 : vector<32x128xf32>
    %c0_5 = arith.constant 0 : index
    %c0_6 = arith.constant 0 : index
    %11 = vector.load %arg8[%c0_5, %c0_6] : memref<32x128xf32, #tpu.memory_space<vmem>>, vector<32x128xf32>
    tpu.vector_store %arg8[%c0_5, %c0_6], %10 {strides = array<i32>} : memref<32x128xf32, #tpu.memory_space<vmem>>, vector<32x128xf32>,
    %c0_i32_7 = arith.constant 0 : i32
    %12 = arith.cmpi eq, %arg2, %c0_i32_7 : i32
    %13 = arith.extui %12 : i1 to i32
    %c0_i32_8 = arith.constant 0 : i32
    %14 = arith.cmpi ne, %13, %c0_i32_8 : i32
    scf.if %14 {
      %c0_9 = arith.constant 0 : index
      %c0_10 = arith.constant 0 : index
      %15 = vector.load %arg8[%c0_9, %c0_10] : memref<32x128xf32, #tpu.memory_space<vmem>>, vector<32x128xf32>
      %c0_11 = arith.constant 0 : index
      %c0_12 = arith.constant 0 : index
      %16 = vector.load %arg5[%c0_11, %c0_12] : memref<1x128xf32, #tpu.memory_space<vmem>>, vector<1x128xf32>
      %17 = vector.broadcast %16 : vector<1x128xf32> to vector<32x128xf32>
      %18 = arith.addf %15, %17 : vector<32x128xf32>
      %cst_13 = arith.constant dense<0.000000e+00> : vector<128xf32>
      %19 = vector.multi_reduction <add>, %18, %cst_13 [0] : vector<32x128xf32> to vector<128xf32>
      %20 = vector.shape_cast %19 : vector<128xf32> to vector<1x128xf32>
      %21 = arith.mulf %18, %18 : vector<32x128xf32>
      %cst_14 = arith.constant dense<0.000000e+00> : vector<128xf32>
      %22 = vector.multi_reduction <add>, %21, %cst_14 [0] : vector<32x128xf32> to vector<128xf32>
      %23 = vector.shape_cast %22 : vector<128xf32> to vector<1x128xf32>
      %24 = tpu.iota {dimensions = array<i32: 0>} : vector<8x128xi32>
      %c0_i32_15 = arith.constant 0 : i32
      %25 = vector.broadcast %c0_i32_15 : i32 to vector<8x128xi32>
      %26 = arith.cmpi eq, %24, %25 : vector<8x128xi32>
      %c1_i32 = arith.constant 1 : i32
      %27 = vector.broadcast %c1_i32 : i32 to vector<8x128xi32>
      %28 = arith.cmpi eq, %24, %27 : vector<8x128xi32>
      %cst_16 = arith.constant 0.000000e+00 : f32
      %29 = vector.shape_cast %23 : vector<1x128xf32> to vector<1x128xf32>
      %30 = vector.broadcast %29 : vector<1x128xf32> to vector<8x128xf32>
      %31 = vector.broadcast %cst_16 : f32 to vector<8x128xf32>
      %32 = arith.select %28, %30, %31 : vector<8x128xi1>, vector<8x128xf32>
      %33 = vector.shape_cast %20 : vector<1x128xf32> to vector<1x128xf32>
      %34 = vector.broadcast %33 : vector<1x128xf32> to vector<8x128xf32>
      %35 = arith.select %26, %34, %32 : vector<8x128xi1>, vector<8x128xf32>
      %c0_17 = arith.constant 0 : index
      %c0_18 = arith.constant 0 : index
      %36 = vector.load %arg7[%c0_17, %c0_18] : memref<8x128xf32, #tpu.memory_space<vmem>>, vector<8x128xf32>
      tpu.vector_store %arg7[%c0_17, %c0_18], %35 {strides = array<i32>} : memref<8x128xf32, #tpu.memory_space<vmem>>, vector<8x128xf32>,
      %37 = arith.truncf %18 : vector<32x128xf32> to vector<32x128xbf16>
      %c0_19 = arith.constant 0 : index
      %c0_20 = arith.constant 0 : index
      %38 = vector.load %arg6[%c0_19, %c0_20] : memref<32x128xbf16, #tpu.memory_space<vmem>>, vector<32x128xbf16>
      tpu.vector_store %arg6[%c0_19, %c0_20], %37 {strides = array<i32>} : memref<32x128xbf16, #tpu.memory_space<vmem>>, vector<32x128xbf16>,
    } else {
    }
    return
  }
  func.func @transform_0(%arg0: i32, %arg1: i32, %arg2: i32) -> (i32, i32) {
    %c0_i32 = arith.constant 0 : i32
    return %arg0, %arg2 : i32, i32
  }
  func.func @transform_1(%arg0: i32, %arg1: i32, %arg2: i32) -> (i32, i32) {
    %c0_i32 = arith.constant 0 : i32
    %c0_i32_0 = arith.constant 0 : i32
    return %c0_i32, %arg1 : i32, i32
  }
  func.func @transform_2(%arg0: i32, %arg1: i32, %arg2: i32) -> (i32, i32) {
    %c0_i32 = arith.constant 0 : i32
    %c0_i32_0 = arith.constant 0 : i32
    return %c0_i32, %arg1 : i32, i32
  }
  func.func @transform_3(%arg0: i32, %arg1: i32, %arg2: i32) -> (i32, i32) {
    %c0_i32 = arith.constant 0 : i32
    return %arg0, %arg1 : i32, i32
  }
  func.func @transform_4(%arg0: i32, %arg1: i32, %arg2: i32) -> (i32, i32) {
    %c0_i32 = arith.constant 0 : i32
    return %arg0, %arg1 : i32, i32
  }
}

module attributes {stable_mosaic.version = 11 : i64} {
  func.func @_affine_act_kernel(%arg0: i32, %arg1: memref<32x128xbf16, #tpu.memory_space<vmem>>, %arg2: memref<1x128xf32, #tpu.memory_space<vmem>>, %arg3: memref<1x128xf32, #tpu.memory_space<vmem>>, %arg4: memref<32x128xbf16, #tpu.memory_space<vmem>>, %arg5: memref<32x128xbf16, #tpu.memory_space<vmem>>) attributes {dimension_semantics = [#tpu.dimension_semantics<parallel>], iteration_bounds = array<i64: 1>, scalar_prefetch = 0 : i64, scratch_operands = 0 : i64, tpu.core_type = #tpu.core_type<tc>, window_params = [{transform_indices = @transform_0, window_bounds = array<i64: 32, 128>}, {pipeline_mode = #tpu.pipeline_mode<synchronous>, transform_indices = @transform_1, window_bounds = array<i64: 1, 128>}, {pipeline_mode = #tpu.pipeline_mode<synchronous>, transform_indices = @transform_2, window_bounds = array<i64: 1, 128>}, {transform_indices = @transform_3, window_bounds = array<i64: 32, 128>}, {transform_indices = @transform_4, window_bounds = array<i64: 32, 128>}]} {
    %c0 = arith.constant 0 : index
    %c0_0 = arith.constant 0 : index
    %0 = vector.load %arg1[%c0, %c0_0] : memref<32x128xbf16, #tpu.memory_space<vmem>>, vector<32x128xbf16>
    %1 = arith.extf %0 : vector<32x128xbf16> to vector<32x128xf32>
    %c0_1 = arith.constant 0 : index
    %c0_2 = arith.constant 0 : index
    %2 = vector.load %arg2[%c0_1, %c0_2] : memref<1x128xf32, #tpu.memory_space<vmem>>, vector<1x128xf32>
    %3 = vector.broadcast %2 : vector<1x128xf32> to vector<32x128xf32>
    %4 = arith.mulf %1, %3 : vector<32x128xf32>
    %c0_3 = arith.constant 0 : index
    %c0_4 = arith.constant 0 : index
    %5 = vector.load %arg3[%c0_3, %c0_4] : memref<1x128xf32, #tpu.memory_space<vmem>>, vector<1x128xf32>
    %6 = vector.broadcast %5 : vector<1x128xf32> to vector<32x128xf32>
    %7 = arith.addf %4, %6 : vector<32x128xf32>
    %cst = arith.constant 0.000000e+00 : f32
    %8 = vector.broadcast %cst : f32 to vector<32x128xf32>
    %9 = arith.cmpf ogt, %7, %8 : vector<32x128xf32>
    %cst_5 = arith.constant 2.000000e-01 : f32
    %10 = vector.broadcast %cst_5 : f32 to vector<32x128xf32>
    %11 = arith.mulf %10, %7 : vector<32x128xf32>
    %12 = arith.select %9, %7, %11 : vector<32x128xi1>, vector<32x128xf32>
    %13 = arith.truncf %12 : vector<32x128xf32> to vector<32x128xbf16>
    %c0_6 = arith.constant 0 : index
    %c0_7 = arith.constant 0 : index
    %14 = vector.load %arg4[%c0_6, %c0_7] : memref<32x128xbf16, #tpu.memory_space<vmem>>, vector<32x128xbf16>
    tpu.vector_store %arg4[%c0_6, %c0_7], %13 {strides = array<i32>} : memref<32x128xbf16, #tpu.memory_space<vmem>>, vector<32x128xbf16>,
    %cst_8 = arith.constant 0.000000e+00 : f32
    %15 = vector.broadcast %cst_8 : f32 to vector<32x128xf32>
    %16 = arith.maximumf %7, %15 : vector<32x128xf32>
    %17 = arith.truncf %16 : vector<32x128xf32> to vector<32x128xbf16>
    %c0_9 = arith.constant 0 : index
    %c0_10 = arith.constant 0 : index
    %18 = vector.load %arg5[%c0_9, %c0_10] : memref<32x128xbf16, #tpu.memory_space<vmem>>, vector<32x128xbf16>
    tpu.vector_store %arg5[%c0_9, %c0_10], %17 {strides = array<i32>} : memref<32x128xbf16, #tpu.memory_space<vmem>>, vector<32x128xbf16>,
    return
  }
  func.func @transform_0(%arg0: i32) -> (i32, i32) {
    %c0_i32 = arith.constant 0 : i32
    %c0_i32_0 = arith.constant 0 : i32
    return %arg0, %c0_i32 : i32, i32
  }
  func.func @transform_1(%arg0: i32) -> (i32, i32) {
    %c0_i32 = arith.constant 0 : i32
    %c0_i32_0 = arith.constant 0 : i32
    %c0_i32_1 = arith.constant 0 : i32
    return %c0_i32, %c0_i32_0 : i32, i32
  }
  func.func @transform_2(%arg0: i32) -> (i32, i32) {
    %c0_i32 = arith.constant 0 : i32
    %c0_i32_0 = arith.constant 0 : i32
    %c0_i32_1 = arith.constant 0 : i32
    return %c0_i32, %c0_i32_0 : i32, i32
  }
  func.func @transform_3(%arg0: i32) -> (i32, i32) {
    %c0_i32 = arith.constant 0 : i32
    %c0_i32_0 = arith.constant 0 : i32
    return %arg0, %c0_i32 : i32, i32
  }
  func.func @transform_4(%arg0: i32) -> (i32, i32) {
    %c0_i32 = arith.constant 0 : i32
    %c0_i32_0 = arith.constant 0 : i32
    return %arg0, %c0_i32 : i32, i32
  }
}

module attributes {stable_mosaic.version = 11 : i64} {
  func.func @_mm_kernel(%arg0: i32, %arg1: i32, %arg2: i32, %arg3: memref<16x256xbf16, #tpu.memory_space<vmem>>, %arg4: memref<256x128xbf16, #tpu.memory_space<vmem>>, %arg5: memref<1x128xf32, #tpu.memory_space<vmem>>, %arg6: memref<16x128xbf16, #tpu.memory_space<vmem>>, %arg7: memref<8x128xf32, #tpu.memory_space<vmem>>, %arg8: memref<16x128xf32, #tpu.memory_space<vmem>>) attributes {dimension_semantics = [#tpu.dimension_semantics<parallel>, #tpu.dimension_semantics<parallel>, #tpu.dimension_semantics<arbitrary>], iteration_bounds = array<i64: 1, 1, 1>, scalar_prefetch = 0 : i64, scratch_operands = 1 : i64, tpu.core_type = #tpu.core_type<tc>, window_params = [{transform_indices = @transform_0, window_bounds = array<i64: 16, 256>}, {transform_indices = @transform_1, window_bounds = array<i64: 256, 128>}, {transform_indices = @transform_2, window_bounds = array<i64: 1, 128>}, {transform_indices = @transform_3, window_bounds = array<i64: 16, 128>}, {transform_indices = @transform_4, window_bounds = array<i64: 8, 128>}]} {
    %c0_i32 = arith.constant 0 : i32
    %0 = arith.cmpi eq, %arg2, %c0_i32 : i32
    %1 = arith.extui %0 : i1 to i32
    %c0_i32_0 = arith.constant 0 : i32
    %2 = arith.cmpi ne, %1, %c0_i32_0 : i32
    scf.if %2 {
      %cst_9 = arith.constant 0.000000e+00 : f32
      %15 = vector.broadcast %cst_9 : f32 to vector<16x128xf32>
      %c0_10 = arith.constant 0 : index
      %c0_11 = arith.constant 0 : index
      %16 = vector.load %arg8[%c0_10, %c0_11] : memref<16x128xf32, #tpu.memory_space<vmem>>, vector<16x128xf32>
      tpu.vector_store %arg8[%c0_10, %c0_11], %15 {strides = array<i32>} : memref<16x128xf32, #tpu.memory_space<vmem>>, vector<16x128xf32>,
    } else {
    }
    %c256_i32 = arith.constant 256 : i32
    %3 = arith.muli %arg2, %c256_i32 : i32
    %4 = tpu.assume_multiple %3, 256 : i32
    %c0 = arith.constant 0 : index
    %c0_1 = arith.constant 0 : index
    %5 = vector.load %arg8[%c0, %c0_1] : memref<16x128xf32, #tpu.memory_space<vmem>>, vector<16x128xf32>
    %c0_2 = arith.constant 0 : index
    %c0_3 = arith.constant 0 : index
    %6 = vector.load %arg3[%c0_2, %c0_3] : memref<16x256xbf16, #tpu.memory_space<vmem>>, vector<16x256xbf16>
    %7 = arith.index_cast %4 : i32 to index
    %c0_4 = arith.constant 0 : index
    %8 = vector.load %arg4[%7, %c0_4] : memref<256x128xbf16, #tpu.memory_space<vmem>>, vector<256x128xbf16>
    %cst = arith.constant dense<0.000000e+00> : vector<16x128xf32>
    %9 = tpu.matmul %6, %8, %cst {dimension_numbers = #tpu.dot_dimension_numbers<[1], [0], [0], [1], [0, 0, 1, 1], [], []>} : vector<16x256xbf16>, vector<256x128xbf16>, vector<16x128xf32> -> vector<16x128xf32>
    %10 = arith.addf %5, %9 : vector<16x128xf32>
    %c0_5 = arith.constant 0 : index
    %c0_6 = arith.constant 0 : index
    %11 = vector.load %arg8[%c0_5, %c0_6] : memref<16x128xf32, #tpu.memory_space<vmem>>, vector<16x128xf32>
    tpu.vector_store %arg8[%c0_5, %c0_6], %10 {strides = array<i32>} : memref<16x128xf32, #tpu.memory_space<vmem>>, vector<16x128xf32>,
    %c0_i32_7 = arith.constant 0 : i32
    %12 = arith.cmpi eq, %arg2, %c0_i32_7 : i32
    %13 = arith.extui %12 : i1 to i32
    %c0_i32_8 = arith.constant 0 : i32
    %14 = arith.cmpi ne, %13, %c0_i32_8 : i32
    scf.if %14 {
      %c0_9 = arith.constant 0 : index
      %c0_10 = arith.constant 0 : index
      %15 = vector.load %arg8[%c0_9, %c0_10] : memref<16x128xf32, #tpu.memory_space<vmem>>, vector<16x128xf32>
      %c0_11 = arith.constant 0 : index
      %c0_12 = arith.constant 0 : index
      %16 = vector.load %arg5[%c0_11, %c0_12] : memref<1x128xf32, #tpu.memory_space<vmem>>, vector<1x128xf32>
      %17 = vector.broadcast %16 : vector<1x128xf32> to vector<16x128xf32>
      %18 = arith.addf %15, %17 : vector<16x128xf32>
      %cst_13 = arith.constant dense<0.000000e+00> : vector<128xf32>
      %19 = vector.multi_reduction <add>, %18, %cst_13 [0] : vector<16x128xf32> to vector<128xf32>
      %20 = vector.shape_cast %19 : vector<128xf32> to vector<1x128xf32>
      %21 = arith.mulf %18, %18 : vector<16x128xf32>
      %cst_14 = arith.constant dense<0.000000e+00> : vector<128xf32>
      %22 = vector.multi_reduction <add>, %21, %cst_14 [0] : vector<16x128xf32> to vector<128xf32>
      %23 = vector.shape_cast %22 : vector<128xf32> to vector<1x128xf32>
      %24 = tpu.iota {dimensions = array<i32: 0>} : vector<8x128xi32>
      %c0_i32_15 = arith.constant 0 : i32
      %25 = vector.broadcast %c0_i32_15 : i32 to vector<8x128xi32>
      %26 = arith.cmpi eq, %24, %25 : vector<8x128xi32>
      %c1_i32 = arith.constant 1 : i32
      %27 = vector.broadcast %c1_i32 : i32 to vector<8x128xi32>
      %28 = arith.cmpi eq, %24, %27 : vector<8x128xi32>
      %cst_16 = arith.constant 0.000000e+00 : f32
      %29 = vector.shape_cast %23 : vector<1x128xf32> to vector<1x128xf32>
      %30 = vector.broadcast %29 : vector<1x128xf32> to vector<8x128xf32>
      %31 = vector.broadcast %cst_16 : f32 to vector<8x128xf32>
      %32 = arith.select %28, %30, %31 : vector<8x128xi1>, vector<8x128xf32>
      %33 = vector.shape_cast %20 : vector<1x128xf32> to vector<1x128xf32>
      %34 = vector.broadcast %33 : vector<1x128xf32> to vector<8x128xf32>
      %35 = arith.select %26, %34, %32 : vector<8x128xi1>, vector<8x128xf32>
      %c0_17 = arith.constant 0 : index
      %c0_18 = arith.constant 0 : index
      %36 = vector.load %arg7[%c0_17, %c0_18] : memref<8x128xf32, #tpu.memory_space<vmem>>, vector<8x128xf32>
      tpu.vector_store %arg7[%c0_17, %c0_18], %35 {strides = array<i32>} : memref<8x128xf32, #tpu.memory_space<vmem>>, vector<8x128xf32>,
      %37 = arith.truncf %18 : vector<16x128xf32> to vector<16x128xbf16>
      %c0_19 = arith.constant 0 : index
      %c0_20 = arith.constant 0 : index
      %38 = vector.load %arg6[%c0_19, %c0_20] : memref<16x128xbf16, #tpu.memory_space<vmem>>, vector<16x128xbf16>
      tpu.vector_store %arg6[%c0_19, %c0_20], %37 {strides = array<i32>} : memref<16x128xbf16, #tpu.memory_space<vmem>>, vector<16x128xbf16>,
    } else {
    }
    return
  }
  func.func @transform_0(%arg0: i32, %arg1: i32, %arg2: i32) -> (i32, i32) {
    %c0_i32 = arith.constant 0 : i32
    return %arg0, %arg2 : i32, i32
  }
  func.func @transform_1(%arg0: i32, %arg1: i32, %arg2: i32) -> (i32, i32) {
    %c0_i32 = arith.constant 0 : i32
    %c0_i32_0 = arith.constant 0 : i32
    return %c0_i32, %arg1 : i32, i32
  }
  func.func @transform_2(%arg0: i32, %arg1: i32, %arg2: i32) -> (i32, i32) {
    %c0_i32 = arith.constant 0 : i32
    %c0_i32_0 = arith.constant 0 : i32
    return %c0_i32, %arg1 : i32, i32
  }
  func.func @transform_3(%arg0: i32, %arg1: i32, %arg2: i32) -> (i32, i32) {
    %c0_i32 = arith.constant 0 : i32
    return %arg0, %arg1 : i32, i32
  }
  func.func @transform_4(%arg0: i32, %arg1: i32, %arg2: i32) -> (i32, i32) {
    %c0_i32 = arith.constant 0 : i32
    return %arg0, %arg1 : i32, i32
  }
}

module attributes {stable_mosaic.version = 11 : i64} {
  func.func @_affine_act_kernel(%arg0: i32, %arg1: memref<16x128xbf16, #tpu.memory_space<vmem>>, %arg2: memref<1x128xf32, #tpu.memory_space<vmem>>, %arg3: memref<1x128xf32, #tpu.memory_space<vmem>>, %arg4: memref<16x128xbf16, #tpu.memory_space<vmem>>, %arg5: memref<16x128xbf16, #tpu.memory_space<vmem>>) attributes {dimension_semantics = [#tpu.dimension_semantics<parallel>], iteration_bounds = array<i64: 1>, scalar_prefetch = 0 : i64, scratch_operands = 0 : i64, tpu.core_type = #tpu.core_type<tc>, window_params = [{transform_indices = @transform_0, window_bounds = array<i64: 16, 128>}, {pipeline_mode = #tpu.pipeline_mode<synchronous>, transform_indices = @transform_1, window_bounds = array<i64: 1, 128>}, {pipeline_mode = #tpu.pipeline_mode<synchronous>, transform_indices = @transform_2, window_bounds = array<i64: 1, 128>}, {transform_indices = @transform_3, window_bounds = array<i64: 16, 128>}, {transform_indices = @transform_4, window_bounds = array<i64: 16, 128>}]} {
    %c0 = arith.constant 0 : index
    %c0_0 = arith.constant 0 : index
    %0 = vector.load %arg1[%c0, %c0_0] : memref<16x128xbf16, #tpu.memory_space<vmem>>, vector<16x128xbf16>
    %1 = arith.extf %0 : vector<16x128xbf16> to vector<16x128xf32>
    %c0_1 = arith.constant 0 : index
    %c0_2 = arith.constant 0 : index
    %2 = vector.load %arg2[%c0_1, %c0_2] : memref<1x128xf32, #tpu.memory_space<vmem>>, vector<1x128xf32>
    %3 = vector.broadcast %2 : vector<1x128xf32> to vector<16x128xf32>
    %4 = arith.mulf %1, %3 : vector<16x128xf32>
    %c0_3 = arith.constant 0 : index
    %c0_4 = arith.constant 0 : index
    %5 = vector.load %arg3[%c0_3, %c0_4] : memref<1x128xf32, #tpu.memory_space<vmem>>, vector<1x128xf32>
    %6 = vector.broadcast %5 : vector<1x128xf32> to vector<16x128xf32>
    %7 = arith.addf %4, %6 : vector<16x128xf32>
    %cst = arith.constant 0.000000e+00 : f32
    %8 = vector.broadcast %cst : f32 to vector<16x128xf32>
    %9 = arith.cmpf ogt, %7, %8 : vector<16x128xf32>
    %cst_5 = arith.constant 2.000000e-01 : f32
    %10 = vector.broadcast %cst_5 : f32 to vector<16x128xf32>
    %11 = arith.mulf %10, %7 : vector<16x128xf32>
    %12 = arith.select %9, %7, %11 : vector<16x128xi1>, vector<16x128xf32>
    %13 = arith.truncf %12 : vector<16x128xf32> to vector<16x128xbf16>
    %c0_6 = arith.constant 0 : index
    %c0_7 = arith.constant 0 : index
    %14 = vector.load %arg4[%c0_6, %c0_7] : memref<16x128xbf16, #tpu.memory_space<vmem>>, vector<16x128xbf16>
    tpu.vector_store %arg4[%c0_6, %c0_7], %13 {strides = array<i32>} : memref<16x128xbf16, #tpu.memory_space<vmem>>, vector<16x128xbf16>,
    %cst_8 = arith.constant 0.000000e+00 : f32
    %15 = vector.broadcast %cst_8 : f32 to vector<16x128xf32>
    %16 = arith.maximumf %7, %15 : vector<16x128xf32>
    %17 = arith.truncf %16 : vector<16x128xf32> to vector<16x128xbf16>
    %c0_9 = arith.constant 0 : index
    %c0_10 = arith.constant 0 : index
    %18 = vector.load %arg5[%c0_9, %c0_10] : memref<16x128xbf16, #tpu.memory_space<vmem>>, vector<16x128xbf16>
    tpu.vector_store %arg5[%c0_9, %c0_10], %17 {strides = array<i32>} : memref<16x128xbf16, #tpu.memory_space<vmem>>, vector<16x128xbf16>,
    return
  }
  func.func @transform_0(%arg0: i32) -> (i32, i32) {
    %c0_i32 = arith.constant 0 : i32
    %c0_i32_0 = arith.constant 0 : i32
    return %arg0, %c0_i32 : i32, i32
  }
  func.func @transform_1(%arg0: i32) -> (i32, i32) {
    %c0_i32 = arith.constant 0 : i32
    %c0_i32_0 = arith.constant 0 : i32
    %c0_i32_1 = arith.constant 0 : i32
    return %c0_i32, %c0_i32_0 : i32, i32
  }
  func.func @transform_2(%arg0: i32) -> (i32, i32) {
    %c0_i32 = arith.constant 0 : i32
    %c0_i32_0 = arith.constant 0 : i32
    %c0_i32_1 = arith.constant 0 : i32
    return %c0_i32, %c0_i32_0 : i32, i32
  }
  func.func @transform_3(%arg0: i32) -> (i32, i32) {
    %c0_i32 = arith.constant 0 : i32
    %c0_i32_0 = arith.constant 0 : i32
    return %arg0, %c0_i32 : i32, i32
  }
  func.func @transform_4(%arg0: i32) -> (i32, i32) {
    %c0_i32 = arith.constant 0 : i32
    %c0_i32_0 = arith.constant 0 : i32
    return %arg0, %c0_i32 : i32, i32
  }
}

module attributes {stable_mosaic.version = 11 : i64} {
  func.func @_mm_kernel(%arg0: i32, %arg1: i32, %arg2: i32, %arg3: memref<16x512xbf16, #tpu.memory_space<vmem>>, %arg4: memref<512x128xbf16, #tpu.memory_space<vmem>>, %arg5: memref<1x128xf32, #tpu.memory_space<vmem>>, %arg6: memref<16x128xbf16, #tpu.memory_space<vmem>>, %arg7: memref<16x128xf32, #tpu.memory_space<vmem>>) attributes {dimension_semantics = [#tpu.dimension_semantics<parallel>, #tpu.dimension_semantics<parallel>, #tpu.dimension_semantics<arbitrary>], iteration_bounds = array<i64: 1, 1, 1>, scalar_prefetch = 0 : i64, scratch_operands = 1 : i64, tpu.core_type = #tpu.core_type<tc>, window_params = [{transform_indices = @transform_0, window_bounds = array<i64: 16, 512>}, {transform_indices = @transform_1, window_bounds = array<i64: 512, 128>}, {transform_indices = @transform_2, window_bounds = array<i64: 1, 128>}, {transform_indices = @transform_3, window_bounds = array<i64: 16, 128>}]} {
    %c0_i32 = arith.constant 0 : i32
    %0 = arith.cmpi eq, %arg2, %c0_i32 : i32
    %1 = arith.extui %0 : i1 to i32
    %c0_i32_0 = arith.constant 0 : i32
    %2 = arith.cmpi ne, %1, %c0_i32_0 : i32
    scf.if %2 {
      %cst_9 = arith.constant 0.000000e+00 : f32
      %15 = vector.broadcast %cst_9 : f32 to vector<16x128xf32>
      %c0_10 = arith.constant 0 : index
      %c0_11 = arith.constant 0 : index
      %16 = vector.load %arg7[%c0_10, %c0_11] : memref<16x128xf32, #tpu.memory_space<vmem>>, vector<16x128xf32>
      tpu.vector_store %arg7[%c0_10, %c0_11], %15 {strides = array<i32>} : memref<16x128xf32, #tpu.memory_space<vmem>>, vector<16x128xf32>,
    } else {
    }
    %c512_i32 = arith.constant 512 : i32
    %3 = arith.muli %arg2, %c512_i32 : i32
    %4 = tpu.assume_multiple %3, 512 : i32
    %c0 = arith.constant 0 : index
    %c0_1 = arith.constant 0 : index
    %5 = vector.load %arg7[%c0, %c0_1] : memref<16x128xf32, #tpu.memory_space<vmem>>, vector<16x128xf32>
    %c0_2 = arith.constant 0 : index
    %c0_3 = arith.constant 0 : index
    %6 = vector.load %arg3[%c0_2, %c0_3] : memref<16x512xbf16, #tpu.memory_space<vmem>>, vector<16x512xbf16>
    %7 = arith.index_cast %4 : i32 to index
    %c0_4 = arith.constant 0 : index
    %8 = vector.load %arg4[%7, %c0_4] : memref<512x128xbf16, #tpu.memory_space<vmem>>, vector<512x128xbf16>
    %cst = arith.constant dense<0.000000e+00> : vector<16x128xf32>
    %9 = tpu.matmul %6, %8, %cst {dimension_numbers = #tpu.dot_dimension_numbers<[1], [0], [0], [1], [0, 0, 1, 1], [], []>} : vector<16x512xbf16>, vector<512x128xbf16>, vector<16x128xf32> -> vector<16x128xf32>
    %10 = arith.addf %5, %9 : vector<16x128xf32>
    %c0_5 = arith.constant 0 : index
    %c0_6 = arith.constant 0 : index
    %11 = vector.load %arg7[%c0_5, %c0_6] : memref<16x128xf32, #tpu.memory_space<vmem>>, vector<16x128xf32>
    tpu.vector_store %arg7[%c0_5, %c0_6], %10 {strides = array<i32>} : memref<16x128xf32, #tpu.memory_space<vmem>>, vector<16x128xf32>,
    %c0_i32_7 = arith.constant 0 : i32
    %12 = arith.cmpi eq, %arg2, %c0_i32_7 : i32
    %13 = arith.extui %12 : i1 to i32
    %c0_i32_8 = arith.constant 0 : i32
    %14 = arith.cmpi ne, %13, %c0_i32_8 : i32
    scf.if %14 {
      %c0_9 = arith.constant 0 : index
      %c0_10 = arith.constant 0 : index
      %15 = vector.load %arg7[%c0_9, %c0_10] : memref<16x128xf32, #tpu.memory_space<vmem>>, vector<16x128xf32>
      %c0_11 = arith.constant 0 : index
      %c0_12 = arith.constant 0 : index
      %16 = vector.load %arg5[%c0_11, %c0_12] : memref<1x128xf32, #tpu.memory_space<vmem>>, vector<1x128xf32>
      %17 = vector.broadcast %16 : vector<1x128xf32> to vector<16x128xf32>
      %18 = arith.addf %15, %17 : vector<16x128xf32>
      %cst_13 = arith.constant 0.000000e+00 : f32
      %19 = vector.broadcast %cst_13 : f32 to vector<16x128xf32>
      %20 = arith.maximumf %18, %19 : vector<16x128xf32>
      %21 = arith.truncf %20 : vector<16x128xf32> to vector<16x128xbf16>
      %c0_14 = arith.constant 0 : index
      %c0_15 = arith.constant 0 : index
      %22 = vector.load %arg6[%c0_14, %c0_15] : memref<16x128xbf16, #tpu.memory_space<vmem>>, vector<16x128xbf16>
      tpu.vector_store %arg6[%c0_14, %c0_15], %21 {strides = array<i32>} : memref<16x128xbf16, #tpu.memory_space<vmem>>, vector<16x128xbf16>,
    } else {
    }
    return
  }
  func.func @transform_0(%arg0: i32, %arg1: i32, %arg2: i32) -> (i32, i32) {
    %c0_i32 = arith.constant 0 : i32
    return %arg0, %arg2 : i32, i32
  }
  func.func @transform_1(%arg0: i32, %arg1: i32, %arg2: i32) -> (i32, i32) {
    %c0_i32 = arith.constant 0 : i32
    %c0_i32_0 = arith.constant 0 : i32
    return %c0_i32, %arg1 : i32, i32
  }
  func.func @transform_2(%arg0: i32, %arg1: i32, %arg2: i32) -> (i32, i32) {
    %c0_i32 = arith.constant 0 : i32
    %c0_i32_0 = arith.constant 0 : i32
    return %c0_i32, %arg1 : i32, i32
  }
  func.func @transform_3(%arg0: i32, %arg1: i32, %arg2: i32) -> (i32, i32) {
    %c0_i32 = arith.constant 0 : i32
    return %arg0, %arg1 : i32, i32
  }
}

module attributes {stable_mosaic.version = 11 : i64} {
  func.func @_mm_kernel(%arg0: i32, %arg1: i32, %arg2: i32, %arg3: memref<16x128xbf16, #tpu.memory_space<vmem>>, %arg4: memref<128x128xbf16, #tpu.memory_space<vmem>>, %arg5: memref<1x128xf32, #tpu.memory_space<vmem>>, %arg6: memref<16x128xbf16, #tpu.memory_space<vmem>>, %arg7: memref<8x128xf32, #tpu.memory_space<vmem>>, %arg8: memref<16x128xf32, #tpu.memory_space<vmem>>) attributes {dimension_semantics = [#tpu.dimension_semantics<parallel>, #tpu.dimension_semantics<parallel>, #tpu.dimension_semantics<arbitrary>], iteration_bounds = array<i64: 1, 1, 1>, scalar_prefetch = 0 : i64, scratch_operands = 1 : i64, tpu.core_type = #tpu.core_type<tc>, window_params = [{transform_indices = @transform_0, window_bounds = array<i64: 16, 128>}, {transform_indices = @transform_1, window_bounds = array<i64: 128, 128>}, {transform_indices = @transform_2, window_bounds = array<i64: 1, 128>}, {transform_indices = @transform_3, window_bounds = array<i64: 16, 128>}, {transform_indices = @transform_4, window_bounds = array<i64: 8, 128>}]} {
    %c0_i32 = arith.constant 0 : i32
    %0 = arith.cmpi eq, %arg2, %c0_i32 : i32
    %1 = arith.extui %0 : i1 to i32
    %c0_i32_0 = arith.constant 0 : i32
    %2 = arith.cmpi ne, %1, %c0_i32_0 : i32
    scf.if %2 {
      %cst_9 = arith.constant 0.000000e+00 : f32
      %15 = vector.broadcast %cst_9 : f32 to vector<16x128xf32>
      %c0_10 = arith.constant 0 : index
      %c0_11 = arith.constant 0 : index
      %16 = vector.load %arg8[%c0_10, %c0_11] : memref<16x128xf32, #tpu.memory_space<vmem>>, vector<16x128xf32>
      tpu.vector_store %arg8[%c0_10, %c0_11], %15 {strides = array<i32>} : memref<16x128xf32, #tpu.memory_space<vmem>>, vector<16x128xf32>,
    } else {
    }
    %c128_i32 = arith.constant 128 : i32
    %3 = arith.muli %arg2, %c128_i32 : i32
    %4 = tpu.assume_multiple %3, 128 : i32
    %c0 = arith.constant 0 : index
    %c0_1 = arith.constant 0 : index
    %5 = vector.load %arg8[%c0, %c0_1] : memref<16x128xf32, #tpu.memory_space<vmem>>, vector<16x128xf32>
    %c0_2 = arith.constant 0 : index
    %c0_3 = arith.constant 0 : index
    %6 = vector.load %arg3[%c0_2, %c0_3] : memref<16x128xbf16, #tpu.memory_space<vmem>>, vector<16x128xbf16>
    %7 = arith.index_cast %4 : i32 to index
    %c0_4 = arith.constant 0 : index
    %8 = vector.load %arg4[%7, %c0_4] : memref<128x128xbf16, #tpu.memory_space<vmem>>, vector<128x128xbf16>
    %cst = arith.constant dense<0.000000e+00> : vector<16x128xf32>
    %9 = tpu.matmul %6, %8, %cst {dimension_numbers = #tpu.dot_dimension_numbers<[1], [0], [0], [1], [0, 0, 1, 1], [], []>} : vector<16x128xbf16>, vector<128x128xbf16>, vector<16x128xf32> -> vector<16x128xf32>
    %10 = arith.addf %5, %9 : vector<16x128xf32>
    %c0_5 = arith.constant 0 : index
    %c0_6 = arith.constant 0 : index
    %11 = vector.load %arg8[%c0_5, %c0_6] : memref<16x128xf32, #tpu.memory_space<vmem>>, vector<16x128xf32>
    tpu.vector_store %arg8[%c0_5, %c0_6], %10 {strides = array<i32>} : memref<16x128xf32, #tpu.memory_space<vmem>>, vector<16x128xf32>,
    %c0_i32_7 = arith.constant 0 : i32
    %12 = arith.cmpi eq, %arg2, %c0_i32_7 : i32
    %13 = arith.extui %12 : i1 to i32
    %c0_i32_8 = arith.constant 0 : i32
    %14 = arith.cmpi ne, %13, %c0_i32_8 : i32
    scf.if %14 {
      %c0_9 = arith.constant 0 : index
      %c0_10 = arith.constant 0 : index
      %15 = vector.load %arg8[%c0_9, %c0_10] : memref<16x128xf32, #tpu.memory_space<vmem>>, vector<16x128xf32>
      %c0_11 = arith.constant 0 : index
      %c0_12 = arith.constant 0 : index
      %16 = vector.load %arg5[%c0_11, %c0_12] : memref<1x128xf32, #tpu.memory_space<vmem>>, vector<1x128xf32>
      %17 = vector.broadcast %16 : vector<1x128xf32> to vector<16x128xf32>
      %18 = arith.addf %15, %17 : vector<16x128xf32>
      %cst_13 = arith.constant dense<0.000000e+00> : vector<128xf32>
      %19 = vector.multi_reduction <add>, %18, %cst_13 [0] : vector<16x128xf32> to vector<128xf32>
      %20 = vector.shape_cast %19 : vector<128xf32> to vector<1x128xf32>
      %21 = arith.mulf %18, %18 : vector<16x128xf32>
      %cst_14 = arith.constant dense<0.000000e+00> : vector<128xf32>
      %22 = vector.multi_reduction <add>, %21, %cst_14 [0] : vector<16x128xf32> to vector<128xf32>
      %23 = vector.shape_cast %22 : vector<128xf32> to vector<1x128xf32>
      %24 = tpu.iota {dimensions = array<i32: 0>} : vector<8x128xi32>
      %c0_i32_15 = arith.constant 0 : i32
      %25 = vector.broadcast %c0_i32_15 : i32 to vector<8x128xi32>
      %26 = arith.cmpi eq, %24, %25 : vector<8x128xi32>
      %c1_i32 = arith.constant 1 : i32
      %27 = vector.broadcast %c1_i32 : i32 to vector<8x128xi32>
      %28 = arith.cmpi eq, %24, %27 : vector<8x128xi32>
      %cst_16 = arith.constant 0.000000e+00 : f32
      %29 = vector.shape_cast %23 : vector<1x128xf32> to vector<1x128xf32>
      %30 = vector.broadcast %29 : vector<1x128xf32> to vector<8x128xf32>
      %31 = vector.broadcast %cst_16 : f32 to vector<8x128xf32>
      %32 = arith.select %28, %30, %31 : vector<8x128xi1>, vector<8x128xf32>
      %33 = vector.shape_cast %20 : vector<1x128xf32> to vector<1x128xf32>
      %34 = vector.broadcast %33 : vector<1x128xf32> to vector<8x128xf32>
      %35 = arith.select %26, %34, %32 : vector<8x128xi1>, vector<8x128xf32>
      %c0_17 = arith.constant 0 : index
      %c0_18 = arith.constant 0 : index
      %36 = vector.load %arg7[%c0_17, %c0_18] : memref<8x128xf32, #tpu.memory_space<vmem>>, vector<8x128xf32>
      tpu.vector_store %arg7[%c0_17, %c0_18], %35 {strides = array<i32>} : memref<8x128xf32, #tpu.memory_space<vmem>>, vector<8x128xf32>,
      %37 = arith.truncf %18 : vector<16x128xf32> to vector<16x128xbf16>
      %c0_19 = arith.constant 0 : index
      %c0_20 = arith.constant 0 : index
      %38 = vector.load %arg6[%c0_19, %c0_20] : memref<16x128xbf16, #tpu.memory_space<vmem>>, vector<16x128xbf16>
      tpu.vector_store %arg6[%c0_19, %c0_20], %37 {strides = array<i32>} : memref<16x128xbf16, #tpu.memory_space<vmem>>, vector<16x128xbf16>,
    } else {
    }
    return
  }
  func.func @transform_0(%arg0: i32, %arg1: i32, %arg2: i32) -> (i32, i32) {
    %c0_i32 = arith.constant 0 : i32
    return %arg0, %arg2 : i32, i32
  }
  func.func @transform_1(%arg0: i32, %arg1: i32, %arg2: i32) -> (i32, i32) {
    %c0_i32 = arith.constant 0 : i32
    %c0_i32_0 = arith.constant 0 : i32
    return %c0_i32, %arg1 : i32, i32
  }
  func.func @transform_2(%arg0: i32, %arg1: i32, %arg2: i32) -> (i32, i32) {
    %c0_i32 = arith.constant 0 : i32
    %c0_i32_0 = arith.constant 0 : i32
    return %c0_i32, %arg1 : i32, i32
  }
  func.func @transform_3(%arg0: i32, %arg1: i32, %arg2: i32) -> (i32, i32) {
    %c0_i32 = arith.constant 0 : i32
    return %arg0, %arg1 : i32, i32
  }
  func.func @transform_4(%arg0: i32, %arg1: i32, %arg2: i32) -> (i32, i32) {
    %c0_i32 = arith.constant 0 : i32
    return %arg0, %arg1 : i32, i32
  }
}

module attributes {stable_mosaic.version = 11 : i64} {
  func.func @_affine_act_kernel(%arg0: i32, %arg1: memref<16x128xbf16, #tpu.memory_space<vmem>>, %arg2: memref<1x128xf32, #tpu.memory_space<vmem>>, %arg3: memref<1x128xf32, #tpu.memory_space<vmem>>, %arg4: memref<16x128xbf16, #tpu.memory_space<vmem>>) attributes {dimension_semantics = [#tpu.dimension_semantics<parallel>], iteration_bounds = array<i64: 1>, scalar_prefetch = 0 : i64, scratch_operands = 0 : i64, tpu.core_type = #tpu.core_type<tc>, window_params = [{transform_indices = @transform_0, window_bounds = array<i64: 16, 128>}, {pipeline_mode = #tpu.pipeline_mode<synchronous>, transform_indices = @transform_1, window_bounds = array<i64: 1, 128>}, {pipeline_mode = #tpu.pipeline_mode<synchronous>, transform_indices = @transform_2, window_bounds = array<i64: 1, 128>}, {transform_indices = @transform_3, window_bounds = array<i64: 16, 128>}]} {
    %c0 = arith.constant 0 : index
    %c0_0 = arith.constant 0 : index
    %0 = vector.load %arg1[%c0, %c0_0] : memref<16x128xbf16, #tpu.memory_space<vmem>>, vector<16x128xbf16>
    %1 = arith.extf %0 : vector<16x128xbf16> to vector<16x128xf32>
    %c0_1 = arith.constant 0 : index
    %c0_2 = arith.constant 0 : index
    %2 = vector.load %arg2[%c0_1, %c0_2] : memref<1x128xf32, #tpu.memory_space<vmem>>, vector<1x128xf32>
    %3 = vector.broadcast %2 : vector<1x128xf32> to vector<16x128xf32>
    %4 = arith.mulf %1, %3 : vector<16x128xf32>
    %c0_3 = arith.constant 0 : index
    %c0_4 = arith.constant 0 : index
    %5 = vector.load %arg3[%c0_3, %c0_4] : memref<1x128xf32, #tpu.memory_space<vmem>>, vector<1x128xf32>
    %6 = vector.broadcast %5 : vector<1x128xf32> to vector<16x128xf32>
    %7 = arith.addf %4, %6 : vector<16x128xf32>
    %cst = arith.constant 0.000000e+00 : f32
    %8 = vector.broadcast %cst : f32 to vector<16x128xf32>
    %9 = arith.maximumf %7, %8 : vector<16x128xf32>
    %10 = arith.truncf %9 : vector<16x128xf32> to vector<16x128xbf16>
    %c0_5 = arith.constant 0 : index
    %c0_6 = arith.constant 0 : index
    %11 = vector.load %arg4[%c0_5, %c0_6] : memref<16x128xbf16, #tpu.memory_space<vmem>>, vector<16x128xbf16>
    tpu.vector_store %arg4[%c0_5, %c0_6], %10 {strides = array<i32>} : memref<16x128xbf16, #tpu.memory_space<vmem>>, vector<16x128xbf16>,
    return
  }
  func.func @transform_0(%arg0: i32) -> (i32, i32) {
    %c0_i32 = arith.constant 0 : i32
    %c0_i32_0 = arith.constant 0 : i32
    return %arg0, %c0_i32 : i32, i32
  }
  func.func @transform_1(%arg0: i32) -> (i32, i32) {
    %c0_i32 = arith.constant 0 : i32
    %c0_i32_0 = arith.constant 0 : i32
    %c0_i32_1 = arith.constant 0 : i32
    return %c0_i32, %c0_i32_0 : i32, i32
  }
  func.func @transform_2(%arg0: i32) -> (i32, i32) {
    %c0_i32 = arith.constant 0 : i32
    %c0_i32_0 = arith.constant 0 : i32
    %c0_i32_1 = arith.constant 0 : i32
    return %c0_i32, %c0_i32_0 : i32, i32
  }
  func.func @transform_3(%arg0: i32) -> (i32, i32) {
    %c0_i32 = arith.constant 0 : i32
    %c0_i32_0 = arith.constant 0 : i32
    return %arg0, %c0_i32 : i32, i32
  }
}

module attributes {stable_mosaic.version = 11 : i64} {
  func.func @_affine_act_kernel(%arg0: i32, %arg1: memref<32x128xbf16, #tpu.memory_space<vmem>>, %arg2: memref<1x128xf32, #tpu.memory_space<vmem>>, %arg3: memref<1x128xf32, #tpu.memory_space<vmem>>, %arg4: memref<32x128xbf16, #tpu.memory_space<vmem>>) attributes {dimension_semantics = [#tpu.dimension_semantics<parallel>], iteration_bounds = array<i64: 1>, scalar_prefetch = 0 : i64, scratch_operands = 0 : i64, tpu.core_type = #tpu.core_type<tc>, window_params = [{transform_indices = @transform_0, window_bounds = array<i64: 32, 128>}, {pipeline_mode = #tpu.pipeline_mode<synchronous>, transform_indices = @transform_1, window_bounds = array<i64: 1, 128>}, {pipeline_mode = #tpu.pipeline_mode<synchronous>, transform_indices = @transform_2, window_bounds = array<i64: 1, 128>}, {transform_indices = @transform_3, window_bounds = array<i64: 32, 128>}]} {
    %c0 = arith.constant 0 : index
    %c0_0 = arith.constant 0 : index
    %0 = vector.load %arg1[%c0, %c0_0] : memref<32x128xbf16, #tpu.memory_space<vmem>>, vector<32x128xbf16>
    %1 = arith.extf %0 : vector<32x128xbf16> to vector<32x128xf32>
    %c0_1 = arith.constant 0 : index
    %c0_2 = arith.constant 0 : index
    %2 = vector.load %arg2[%c0_1, %c0_2] : memref<1x128xf32, #tpu.memory_space<vmem>>, vector<1x128xf32>
    %3 = vector.broadcast %2 : vector<1x128xf32> to vector<32x128xf32>
    %4 = arith.mulf %1, %3 : vector<32x128xf32>
    %c0_3 = arith.constant 0 : index
    %c0_4 = arith.constant 0 : index
    %5 = vector.load %arg3[%c0_3, %c0_4] : memref<1x128xf32, #tpu.memory_space<vmem>>, vector<1x128xf32>
    %6 = vector.broadcast %5 : vector<1x128xf32> to vector<32x128xf32>
    %7 = arith.addf %4, %6 : vector<32x128xf32>
    %cst = arith.constant 0.000000e+00 : f32
    %8 = vector.broadcast %cst : f32 to vector<32x128xf32>
    %9 = arith.maximumf %7, %8 : vector<32x128xf32>
    %10 = arith.truncf %9 : vector<32x128xf32> to vector<32x128xbf16>
    %c0_5 = arith.constant 0 : index
    %c0_6 = arith.constant 0 : index
    %11 = vector.load %arg4[%c0_5, %c0_6] : memref<32x128xbf16, #tpu.memory_space<vmem>>, vector<32x128xbf16>
    tpu.vector_store %arg4[%c0_5, %c0_6], %10 {strides = array<i32>} : memref<32x128xbf16, #tpu.memory_space<vmem>>, vector<32x128xbf16>,
    return
  }
  func.func @transform_0(%arg0: i32) -> (i32, i32) {
    %c0_i32 = arith.constant 0 : i32
    %c0_i32_0 = arith.constant 0 : i32
    return %arg0, %c0_i32 : i32, i32
  }
  func.func @transform_1(%arg0: i32) -> (i32, i32) {
    %c0_i32 = arith.constant 0 : i32
    %c0_i32_0 = arith.constant 0 : i32
    %c0_i32_1 = arith.constant 0 : i32
    return %c0_i32, %c0_i32_0 : i32, i32
  }
  func.func @transform_2(%arg0: i32) -> (i32, i32) {
    %c0_i32 = arith.constant 0 : i32
    %c0_i32_0 = arith.constant 0 : i32
    %c0_i32_1 = arith.constant 0 : i32
    return %c0_i32, %c0_i32_0 : i32, i32
  }
  func.func @transform_3(%arg0: i32) -> (i32, i32) {
    %c0_i32 = arith.constant 0 : i32
    %c0_i32_0 = arith.constant 0 : i32
    return %arg0, %c0_i32 : i32, i32
  }
}

module attributes {stable_mosaic.version = 11 : i64} {
  func.func @_mm_kernel(%arg0: i32, %arg1: i32, %arg2: i32, %arg3: memref<128x128xbf16, #tpu.memory_space<vmem>>, %arg4: memref<128x128xbf16, #tpu.memory_space<vmem>>, %arg5: memref<1x128xf32, #tpu.memory_space<vmem>>, %arg6: memref<128x128xf32, #tpu.memory_space<vmem>>, %arg7: memref<128x128xf32, #tpu.memory_space<vmem>>) attributes {dimension_semantics = [#tpu.dimension_semantics<parallel>, #tpu.dimension_semantics<parallel>, #tpu.dimension_semantics<arbitrary>], iteration_bounds = array<i64: 1, 1, 1>, scalar_prefetch = 0 : i64, scratch_operands = 1 : i64, tpu.core_type = #tpu.core_type<tc>, window_params = [{transform_indices = @transform_0, window_bounds = array<i64: 128, 128>}, {transform_indices = @transform_1, window_bounds = array<i64: 128, 128>}, {transform_indices = @transform_2, window_bounds = array<i64: 1, 128>}, {transform_indices = @transform_3, window_bounds = array<i64: 128, 128>}]} {
    %c0_i32 = arith.constant 0 : i32
    %0 = arith.cmpi eq, %arg2, %c0_i32 : i32
    %1 = arith.extui %0 : i1 to i32
    %c0_i32_0 = arith.constant 0 : i32
    %2 = arith.cmpi ne, %1, %c0_i32_0 : i32
    scf.if %2 {
      %cst_9 = arith.constant 0.000000e+00 : f32
      %15 = vector.broadcast %cst_9 : f32 to vector<128x128xf32>
      %c0_10 = arith.constant 0 : index
      %c0_11 = arith.constant 0 : index
      %16 = vector.load %arg7[%c0_10, %c0_11] : memref<128x128xf32, #tpu.memory_space<vmem>>, vector<128x128xf32>
      tpu.vector_store %arg7[%c0_10, %c0_11], %15 {strides = array<i32>} : memref<128x128xf32, #tpu.memory_space<vmem>>, vector<128x128xf32>,
    } else {
    }
    %c128_i32 = arith.constant 128 : i32
    %3 = arith.muli %arg2, %c128_i32 : i32
    %4 = tpu.assume_multiple %3, 128 : i32
    %c0 = arith.constant 0 : index
    %c0_1 = arith.constant 0 : index
    %5 = vector.load %arg7[%c0, %c0_1] : memref<128x128xf32, #tpu.memory_space<vmem>>, vector<128x128xf32>
    %c0_2 = arith.constant 0 : index
    %c0_3 = arith.constant 0 : index
    %6 = vector.load %arg3[%c0_2, %c0_3] : memref<128x128xbf16, #tpu.memory_space<vmem>>, vector<128x128xbf16>
    %7 = arith.index_cast %4 : i32 to index
    %c0_4 = arith.constant 0 : index
    %8 = vector.load %arg4[%7, %c0_4] : memref<128x128xbf16, #tpu.memory_space<vmem>>, vector<128x128xbf16>
    %cst = arith.constant dense<0.000000e+00> : vector<128x128xf32>
    %9 = tpu.matmul %6, %8, %cst {dimension_numbers = #tpu.dot_dimension_numbers<[1], [0], [0], [1], [0, 0, 1, 1], [], []>} : vector<128x128xbf16>, vector<128x128xbf16>, vector<128x128xf32> -> vector<128x128xf32>
    %10 = arith.addf %5, %9 : vector<128x128xf32>
    %c0_5 = arith.constant 0 : index
    %c0_6 = arith.constant 0 : index
    %11 = vector.load %arg7[%c0_5, %c0_6] : memref<128x128xf32, #tpu.memory_space<vmem>>, vector<128x128xf32>
    tpu.vector_store %arg7[%c0_5, %c0_6], %10 {strides = array<i32>} : memref<128x128xf32, #tpu.memory_space<vmem>>, vector<128x128xf32>,
    %c0_i32_7 = arith.constant 0 : i32
    %12 = arith.cmpi eq, %arg2, %c0_i32_7 : i32
    %13 = arith.extui %12 : i1 to i32
    %c0_i32_8 = arith.constant 0 : i32
    %14 = arith.cmpi ne, %13, %c0_i32_8 : i32
    scf.if %14 {
      %c0_9 = arith.constant 0 : index
      %c0_10 = arith.constant 0 : index
      %15 = vector.load %arg7[%c0_9, %c0_10] : memref<128x128xf32, #tpu.memory_space<vmem>>, vector<128x128xf32>
      %c0_11 = arith.constant 0 : index
      %c0_12 = arith.constant 0 : index
      %16 = vector.load %arg5[%c0_11, %c0_12] : memref<1x128xf32, #tpu.memory_space<vmem>>, vector<1x128xf32>
      %17 = vector.broadcast %16 : vector<1x128xf32> to vector<128x128xf32>
      %18 = arith.addf %15, %17 : vector<128x128xf32>
      %19 = math.tanh %18 : vector<128x128xf32>
      %c0_13 = arith.constant 0 : index
      %c0_14 = arith.constant 0 : index
      %20 = vector.load %arg6[%c0_13, %c0_14] : memref<128x128xf32, #tpu.memory_space<vmem>>, vector<128x128xf32>
      tpu.vector_store %arg6[%c0_13, %c0_14], %19 {strides = array<i32>} : memref<128x128xf32, #tpu.memory_space<vmem>>, vector<128x128xf32>,
    } else {
    }
    return
  }
  func.func @transform_0(%arg0: i32, %arg1: i32, %arg2: i32) -> (i32, i32) {
    %c0_i32 = arith.constant 0 : i32
    return %arg0, %arg2 : i32, i32
  }
  func.func @transform_1(%arg0: i32, %arg1: i32, %arg2: i32) -> (i32, i32) {
    %c0_i32 = arith.constant 0 : i32
    %c0_i32_0 = arith.constant 0 : i32
    return %c0_i32, %arg1 : i32, i32
  }
  func.func @transform_2(%arg0: i32, %arg1: i32, %arg2: i32) -> (i32, i32) {
    %c0_i32 = arith.constant 0 : i32
    %c0_i32_0 = arith.constant 0 : i32
    return %c0_i32, %arg1 : i32, i32
  }
  func.func @transform_3(%arg0: i32, %arg1: i32, %arg2: i32) -> (i32, i32) {
    %c0_i32 = arith.constant 0 : i32
    return %arg0, %arg1 : i32, i32
  }
}

</mosaic_0001>

<bundles_post_ra>
// kernel: _lambda_.34
= control target key start
LH: loop header
LB: loop body
LE: loop exit
PB: predicated region body
PF: predicated region fallthrough
CT: control target
= control target key end

     0   :  { %s785_s1 = inlined_call_operand.vmem [shape: bf16[128,128], index: 1, kind: input, shape index: {}]   ;;  %s786_s2 = inlined_call_operand.vmem [shape: f32[1,128], index: 2, kind: input, shape index: {}]   ;;  %s787_s0 = inlined_call_operand.vmem [shape: bf16[128,128], index: 0, kind: input, shape index: {}]   ;;  %s788_s3 = inlined_call_operand.vmem [shape: bf16[128,128], index: 3, kind: output, shape index: {0}]   ;;  %s789_s4 = inlined_call_operand.vmem [shape: bf16[128,128], index: 4, kind: output, shape index: {1}]  }
   0x1   :  { %v522_v0 = vld [vmem:[%s785_s1 + $0x38] sm:$0xff]  ;;  %v521_v1 = vld [vmem:[%s785_s1 + $0x30] sm:$0xff]  ;;  %v520_v2 = vld [vmem:[%s785_s1 + $0x28] sm:$0xff] }
   0x2   :  { %185 = vmatpush.bf16.msra.mxu0 %v522_v0  ;;  %617 = vmatpush.bf16.msra.mxu1 %v522_v0  ;;  %v519_v3 = vld [vmem:[%s785_s1 + $0x20] sm:$0xff]  ;;  %v518_v4 = vld [vmem:[%s785_s1 + $0x18] sm:$0xff]  ;;  %v517_v5 = vld [vmem:[%s785_s1 + $0x10] sm:$0xff] }
   0x3   :  { %618 = vmatpush.bf16.msra.mxu2 %v522_v0  ;;  %619 = vmatpush.bf16.msra.mxu3 %v522_v0  ;;  %v516_v6 = vld [vmem:[%s785_s1 + $0x8] sm:$0xff]  ;;  %v515_v7 = vld [vmem:[%s785_s1] sm:$0xff]  ;;  %v509_v9 = vld [vmem:[%s787_s0 + $0x10] sm:$0xff] }
   0x4   :  { %v507_v8 = vld [vmem:[%s787_s0] sm:$0xff]  ;;  %v513_v11 = vld [vmem:[%s787_s0 + $0x30] sm:$0xff]  ;;  %v508_v12 = vld [vmem:[%s787_s0 + $0x8] sm:$0xff] }
   0x5   :  { %v511_v10 = vld [vmem:[%s787_s0 + $0x20] sm:$0xff]  ;;  %v510_v13 = vld [vmem:[%s787_s0 + $0x18] sm:$0xff]  ;;  %v512_v14 = vld [vmem:[%s787_s0 + $0x28] sm:$0xff] }
   0x6   :  { %186 = vmatpush.bf16.msra.mxu0 %v521_v1  ;;  %620 = vmatpush.bf16.msra.mxu1 %v521_v1  ;;  %v514_v15 = vld [vmem:[%s787_s0 + $0x38] sm:$0xff]  ;;  %v718_v18 = vld [vmem:[%s786_s2] ss:$0 sm:$0xff] }
   0x7   :  { %621 = vmatpush.bf16.msra.mxu2 %v521_v1  ;;  %622 = vmatpush.bf16.msra.mxu3 %v521_v1 }
   0xa   :  { %187 = vmatpush.bf16.msra.mxu0 %v520_v2  ;;  %623 = vmatpush.bf16.msra.mxu1 %v520_v2 }
   0xb   :  { %624 = vmatpush.bf16.msra.mxu2 %v520_v2  ;;  %625 = vmatpush.bf16.msra.mxu3 %v520_v2 }
   0xe   :  { %188 = vmatpush.bf16.msra.mxu0 %v519_v3  ;;  %626 = vmatpush.bf16.msra.mxu1 %v519_v3 }
   0xf   :  { %627 = vmatpush.bf16.msra.mxu2 %v519_v3  ;;  %628 = vmatpush.bf16.msra.mxu3 %v519_v3 }
  0x12   :  { %189 = vmatpush.bf16.msra.mxu0 %v518_v4  ;;  %629 = vmatpush.bf16.msra.mxu1 %v518_v4 }
  0x13   :  { %630 = vmatpush.bf16.msra.mxu2 %v518_v4  ;;  %631 = vmatpush.bf16.msra.mxu3 %v518_v4 }
  0x16   :  { %190 = vmatpush.bf16.msra.mxu0 %v517_v5  ;;  %632 = vmatpush.bf16.msra.mxu1 %v517_v5 }
  0x17   :  { %633 = vmatpush.bf16.msra.mxu2 %v517_v5  ;;  %634 = vmatpush.bf16.msra.mxu3 %v517_v5 }
  0x1a   :  { %191 = vmatpush.bf16.msra.mxu0 %v516_v6  ;;  %635 = vmatpush.bf16.msra.mxu1 %v516_v6 }
  0x1b   :  { %636 = vmatpush.bf16.msra.mxu2 %v516_v6  ;;  %637 = vmatpush.bf16.msra.mxu3 %v516_v6 }
  0x1e   :  { %192 = vmatpush.bf16.msra.mxu0 %v515_v7  ;;  %638 = vmatpush.bf16.msra.mxu1 %v515_v7 }
  0x1f   :  { %639 = vmatpush.bf16.msra.mxu2 %v515_v7  ;;  %640 = vmatpush.bf16.msra.mxu3 %v515_v7 }
  0x21   :  { %193 = vmatmul.bf16.vlgmr.msra.gmra.mxu0 %v507_v8  ;;  %203 = vmatmul.bf16.vlgmr.msra.gmra.mxu1 %v509_v9 }
  0x22   :  { %213 = vmatmul.bf16.vlgmr.msra.gmra.mxu2 %v511_v10  ;;  %223 = vmatmul.bf16.vlgmr.msra.gmra.mxu3 %v513_v11 }
  0x31   :  { %198 = vmatmul.bf16.gmra.mxu0 %v508_v12  ;;  %208 = vmatmul.bf16.gmra.mxu1 %v510_v13 }
  0x32   :  { %218 = vmatmul.bf16.gmra.mxu2 %v512_v14  ;;  %228 = vmatmul.bf16.gmra.mxu3 %v514_v15 }
  0x9e   :  { %v194_v16 = vpop.f32.mrf.mxu0  ;;  %v204_v17 = vpop.f32.mrf.mxu1 }
  0x9f   :  { %v289_v19 = vadd.f32 %v718_v18, %v194_v16  ;;  %v293_v20 = vadd.f32 %v718_v18, %v204_v17 }
  0xa1   :  { %v321_v25 = vmul.f32 0.2, %v289_v19  ;;  %vm305_vm0 = vcmp.gt.f32.partialorder %v289_v19, 0.0  ;;  %v385_v28 = vmax.f32 %v289_v19, 0.0  ;;  %v325_v29 = vmul.f32 0.2, %v293_v20 }
  0xa2   :  { %vm309_vm1 = vcmp.gt.f32.partialorder %v293_v20, 0.0  ;;  %v389_v30 = vmax.f32 %v293_v20, 0.0 }
  0xa3   :  { %v337_v35 = vsel %vm305_vm0, %v289_v19, %v321_v25  ;;  %v341_v39 = vsel %vm309_vm1, %v293_v20, %v325_v29 }
  0xa5   :  { %v214_v21 = vpop.f32.mrf.mxu2  ;;  %v224_v22 = vpop.f32.mrf.mxu3 }
  0xa6   :  { %v196_v23 = vpop.f32.mrf.mxu0  ;;  %v206_v24 = vpop.f32.mrf.mxu1  ;;  %v297_v32 = vadd.f32 %v718_v18, %v214_v21  ;;  %v301_v36 = vadd.f32 %v718_v18, %v224_v22 }
  0xa7   :  { %v290_v26 = vadd.f32 %v718_v18, %v196_v23  ;;  %v294_v27 = vadd.f32 %v718_v18, %v206_v24 }
  0xa8   :  { %v329_v47 = vmul.f32 0.2, %v297_v32  ;;  %vm313_vm4 = vcmp.gt.f32.partialorder %v297_v32, 0.0  ;;  %v393_v52 = vmax.f32 %v297_v32, 0.0  ;;  %vm317_vm5 = vcmp.gt.f32.partialorder %v301_v36, 0.0 }
  0xa9   :  { %vm306_vm2 = vcmp.gt.f32.partialorder %v290_v26, 0.0  ;;  %v322_v31 = vmul.f32 0.2, %v290_v26  ;;  %v386_v33 = vmax.f32 %v290_v26, 0.0  ;;  %vm310_vm3 = vcmp.gt.f32.partialorder %v294_v27, 0.0 }
  0xaa   :  { %v326_v34 = vmul.f32 0.2, %v294_v27  ;;  %v390_v38 = vmax.f32 %v294_v27, 0.0  ;;  %v333_v53 = vmul.f32 0.2, %v301_v36  ;;  %v397_v56 = vmax.f32 %v301_v36, 0.0 }
  0xab   :  { %v338_v37 = vsel %vm306_vm2, %v290_v26, %v322_v31  ;;  %v566_v41 = vpack.c.bf16 %v386_v33, %v385_v28  ;;  %v345_v60 = vsel %vm313_vm4, %v297_v32, %v329_v47 }
  0xac   :  { %v526_v40 = vpack.c.bf16 %v338_v37, %v337_v35  ;;  %v342_v42 = vsel %vm310_vm3, %v294_v27, %v326_v34  ;;  %v576_v44 = vpack.c.bf16 %v390_v38, %v389_v30  ;;  %v349_v63 = vsel %vm317_vm5, %v301_v36, %v333_v53 }
  0xad   :  { %v536_v43 = vpack.c.bf16 %v342_v42, %v341_v39  ;;  %v216_v45 = vpop.f32.mrf.mxu2  ;;  %v226_v46 = vpop.f32.mrf.mxu3  ;;  %567 = vst [vmem:[%s789_s4] sm:$0xff] %v566_v41  }
  0xae   :  { %527 = vst [vmem:[%s788_s3] sm:$0xff] %v526_v40   ;;  %v298_v48 = vadd.f32 %v718_v18, %v216_v45  ;;  %v302_v49 = vadd.f32 %v718_v18, %v226_v46  ;;  %v199_v50 = vpop.f32.mrf.mxu0  ;;  %v209_v51 = vpop.f32.mrf.mxu1 }
  0xaf   :  { %604 = vst [vmem:[%s788_s3 + $0x10] sm:$0xff] %v536_v43   ;;  %v291_v59 = vadd.f32 %v718_v18, %v199_v50  ;;  %v295_v4 = vadd.f32 %v718_v18, %v209_v51 }
  0xb0   :  { %vm314_vm6 = vcmp.gt.f32.partialorder %v298_v48, 0.0  ;;  %v330_v54 = vmul.f32 0.2, %v298_v48  ;;  %v394_v55 = vmax.f32 %v298_v48, 0.0  ;;  %vm318_vm7 = vcmp.gt.f32.partialorder %v302_v49, 0.0  ;;  %611 = vst [vmem:[%s789_s4 + $0x10] sm:$0xff] %v576_v44  }
  0xb1   :  { %v334_v57 = vmul.f32 0.2, %v302_v49  ;;  %v398_v58 = vmax.f32 %v302_v49, 0.0  ;;  %v323_v5 = vmul.f32 0.2, %v291_v59  ;;  %vm307_vm8 = vcmp.gt.f32.partialorder %v291_v59, 0.0 }
  0xb2   :  { %v346_v61 = vsel %vm314_vm6, %v298_v48, %v330_v54  ;;  %v586_v62 = vpack.c.bf16 %v394_v55, %v393_v52  ;;  %v387_v12 = vmax.f32 %v291_v59, 0.0  ;;  %v327_v13 = vmul.f32 0.2, %v295_v4 }
  0xb3   :  { %v546_v0 = vpack.c.bf16 %v346_v61, %v345_v60  ;;  %v350_v1 = vsel %vm318_vm7, %v302_v49, %v334_v57  ;;  %v596_v2 = vpack.c.bf16 %v398_v58, %v397_v56  ;;  %v339_v14 = vsel %vm307_vm8, %v291_v59, %v323_v5 }
  0xb4   :  { %613 = vst [vmem:[%s789_s4 + $0x20] sm:$0xff] %v586_v62   ;;  %v556_v3 = vpack.c.bf16 %v350_v1, %v349_v63  ;;  %vm311_vm9 = vcmp.gt.f32.partialorder %v295_v4, 0.0  ;;  %v391_v20 = vmax.f32 %v295_v4, 0.0 }
  0xb5   :  { %606 = vst [vmem:[%s788_s3 + $0x20] sm:$0xff] %v546_v0   ;;  %v219_v6 = vpop.f32.mrf.mxu2  ;;  %v229_v7 = vpop.f32.mrf.mxu3  ;;  %v343_v24 = vsel %vm311_vm9, %v295_v4, %v327_v13 }
  0xb6   :  { %608 = vst [vmem:[%s788_s3 + $0x30] sm:$0xff] %v556_v3   ;;  %v201_v8 = vpop.f32.mrf.mxu0  ;;  %v211_v9 = vpop.f32.mrf.mxu1  ;;  %v299_v16 = vadd.f32 %v718_v18, %v219_v6  ;;  %v303_v21 = vadd.f32 %v718_v18, %v229_v7 }
  0xb7   :  { %615 = vst [vmem:[%s789_s4 + $0x30] sm:$0xff] %v596_v2   ;;  %v292_v10 = vadd.f32 %v718_v18, %v201_v8  ;;  %v296_v11 = vadd.f32 %v718_v18, %v211_v9 }
  0xb8   :  { %v331_v32 = vmul.f32 0.2, %v299_v16  ;;  %vm315_vm12 = vcmp.gt.f32.partialorder %v299_v16, 0.0  ;;  %v395_v35 = vmax.f32 %v299_v16, 0.0  ;;  %vm319_vm13 = vcmp.gt.f32.partialorder %v303_v21, 0.0 }
  0xb9   :  { %vm308_vm10 = vcmp.gt.f32.partialorder %v292_v10, 0.0  ;;  %v324_v15 = vmul.f32 0.2, %v292_v10  ;;  %v388_v17 = vmax.f32 %v292_v10, 0.0  ;;  %vm312_vm11 = vcmp.gt.f32.partialorder %v296_v11, 0.0 }
  0xba   :  { %v328_v19 = vmul.f32 0.2, %v296_v11  ;;  %v392_v23 = vmax.f32 %v296_v11, 0.0  ;;  %v335_v36 = vmul.f32 0.2, %v303_v21  ;;  %v399_v39 = vmax.f32 %v303_v21, 0.0 }
  0xbb   :  { %v340_v22 = vsel %vm308_vm10, %v292_v10, %v324_v15  ;;  %v571_v26 = vpack.c.bf16 %v388_v17, %v387_v12  ;;  %v347_v41 = vsel %vm315_vm12, %v299_v16, %v331_v32 }
  0xbc   :  { %v531_v25 = vpack.c.bf16 %v340_v22, %v339_v14  ;;  %v344_v27 = vsel %vm312_vm11, %v296_v11, %v328_v19  ;;  %v581_v29 = vpack.c.bf16 %v392_v23, %v391_v20  ;;  %v351_v44 = vsel %vm319_vm13, %v303_v21, %v335_v36 }
  0xbd   :  { %v541_v28 = vpack.c.bf16 %v344_v27, %v343_v24  ;;  %v221_v30 = vpop.f32.mrf.mxu2  ;;  %v231_v31 = vpop.f32.mrf.mxu3  ;;  %610 = vst [vmem:[%s789_s4 + $0x8] sm:$0xff] %v571_v26  }
  0xbe   :  { %603 = vst [vmem:[%s788_s3 + $0x8] sm:$0xff] %v531_v25   ;;  %v300_v33 = vadd.f32 %v718_v18, %v221_v30  ;;  %v304_v34 = vadd.f32 %v718_v18, %v231_v31 }
  0xbf   :  { %605 = vst [vmem:[%s788_s3 + $0x18] sm:$0xff] %v541_v28  }
  0xc0   :  { %vm316_vm14 = vcmp.gt.f32.partialorder %v300_v33, 0.0  ;;  %v332_v37 = vmul.f32 0.2, %v300_v33  ;;  %v396_v38 = vmax.f32 %v300_v33, 0.0  ;;  %vm320_vm15 = vcmp.gt.f32.partialorder %v304_v34, 0.0  ;;  %612 = vst [vmem:[%s789_s4 + $0x18] sm:$0xff] %v581_v29  }
  0xc1   :  { %v336_v18 = vmul.f32 0.2, %v304_v34  ;;  %v400_v40 = vmax.f32 %v304_v34, 0.0 }
  0xc2   :  { %v348_v42 = vsel %vm316_vm14, %v300_v33, %v332_v37  ;;  %v591_v43 = vpack.c.bf16 %v396_v38, %v395_v35 }
  0xc3   :  { %v551_v45 = vpack.c.bf16 %v348_v42, %v347_v41  ;;  %v352_v46 = vsel %vm320_vm15, %v304_v34, %v336_v18  ;;  %v601_v47 = vpack.c.bf16 %v400_v40, %v399_v39 }
  0xc4   :  { %614 = vst [vmem:[%s789_s4 + $0x28] sm:$0xff] %v591_v43   ;;  %v561_v48 = vpack.c.bf16 %v352_v46, %v351_v44 }
  0xc5   :  { %607 = vst [vmem:[%s788_s3 + $0x28] sm:$0xff] %v551_v45  }
  0xc6   :  { %609 = vst [vmem:[%s788_s3 + $0x38] sm:$0xff] %v561_v48  }
  0xc7   :  { %616 = vst [vmem:[%s789_s4 + $0x38] sm:$0xff] %v601_v47  }

// kernel: _lambda_.36
= control target key start
LH: loop header
LB: loop body
LE: loop exit
PB: predicated region body
PF: predicated region fallthrough
CT: control target
= control target key end

     0   :  { %s162_s0 = inlined_call_operand.vmem [shape: bf16[32,128], index: 0, kind: input, shape index: {}]   ;;  %s163_s1 = inlined_call_operand.vmem [shape: f32[1,128], index: 1, kind: input, shape index: {}]   ;;  %s164_s2 = inlined_call_operand.vmem [shape: f32[1,128], index: 2, kind: input, shape index: {}]   ;;  %s165_s3 = inlined_call_operand.vmem [shape: bf16[32,128], index: 3, kind: output, shape index: {0}]   ;;  %s166_s4 = inlined_call_operand.vmem [shape: bf16[32,128], index: 4, kind: output, shape index: {1}]  }
   0x1   :  { %v81_v0 = vld [vmem:[%s162_s0] sm:$0xff]   ;;  %v108_v5 = vld [vmem:[%s162_s0 + $0x8] sm:$0xff]  }
   0x2   :  { %v111_v1 = vld [vmem:[%s163_s1] ss:$0 sm:$0xff]  ;;  %v82_v2 = vunpack.c.l.bf16 %v81_v0  ;;  %v83_v3 = vunpack.c.h.bf16 %v81_v0  ;;  %v86_v6 = vunpack.c.l.bf16 %v108_v5  ;;  %v87_v7 = vunpack.c.h.bf16 %v108_v5 }
   0x3   :  { %v112_v4 = vld [vmem:[%s164_s2] ss:$0 sm:$0xff] }
   0x4   :  { %v28_v8 = vmul.f32 %v111_v1, %v82_v2  ;;  %v29_v9 = vmul.f32 %v111_v1, %v83_v3  ;;  %v30_v10 = vmul.f32 %v111_v1, %v86_v6  ;;  %v31_v11 = vmul.f32 %v111_v1, %v87_v7 }
   0x6   :  { %v36_v12 = vadd.f32 %v112_v4, %v28_v8  ;;  %v37_v13 = vadd.f32 %v112_v4, %v29_v9  ;;  %v38_v14 = vadd.f32 %v112_v4, %v30_v10  ;;  %v39_v15 = vadd.f32 %v112_v4, %v31_v11 }
   0x8   :  { %vm40_vm0 = vcmp.gt.f32.partialorder %v36_v12, 0.0  ;;  %vm41_vm1 = vcmp.gt.f32.partialorder %v37_v13, 0.0  ;;  %v44_v16 = vmul.f32 0.2, %v36_v12  ;;  %v45_v17 = vmul.f32 0.2, %v37_v13 }
   0x9   :  { %vm42_vm2 = vcmp.gt.f32.partialorder %v38_v14, 0.0  ;;  %vm43_vm3 = vcmp.gt.f32.partialorder %v39_v15, 0.0  ;;  %v46_v18 = vmul.f32 0.2, %v38_v14  ;;  %v47_v19 = vmul.f32 0.2, %v39_v15 }
   0xa   :  { %v48_v20 = vsel %vm40_vm0, %v36_v12, %v44_v16  ;;  %v49_v21 = vsel %vm41_vm1, %v37_v13, %v45_v17  ;;  %v60_v22 = vmax.f32 %v36_v12, 0.0  ;;  %v61_v23 = vmax.f32 %v37_v13, 0.0 }
   0xb   :  { %v91_v24 = vpack.c.bf16 %v49_v21, %v48_v20  ;;  %v50_v25 = vsel %vm42_vm2, %v38_v14, %v46_v18  ;;  %v51_v26 = vsel %vm43_vm3, %v39_v15, %v47_v19  ;;  %v62_v27 = vmax.f32 %v38_v14, 0.0 }
   0xc   :  { %v96_v28 = vpack.c.bf16 %v51_v26, %v50_v25  ;;  %v101_v29 = vpack.c.bf16 %v61_v23, %v60_v22  ;;  %v63_v30 = vmax.f32 %v39_v15, 0.0 }
   0xd   :  { %92 = vst [vmem:[%s165_s3] sm:$0xff] %v91_v24  }
   0xe   :  { %109 = vst [vmem:[%s165_s3 + $0x8] sm:$0xff] %v96_v28   ;;  %v106_v31 = vpack.c.bf16 %v63_v30, %v62_v27 }
   0xf   :  { %102 = vst [vmem:[%s166_s4] sm:$0xff] %v101_v29  }
  0x10   :  { %110 = vst [vmem:[%s166_s4 + $0x8] sm:$0xff] %v106_v31  }

// kernel: _lambda_.35
= control target key start
LH: loop header
LB: loop body
LE: loop exit
PB: predicated region body
PF: predicated region fallthrough
CT: control target
= control target key end

     0   :  { %v177_v34 = vlaneseq  ;;  %s339_s1 = inlined_call_operand.vmem [shape: bf16[128,128], index: 1, kind: input, shape index: {}]   ;;  %s340_s2 = inlined_call_operand.vmem [shape: f32[1,128], index: 2, kind: input, shape index: {}]   ;;  %s341_s0 = inlined_call_operand.vmem [shape: bf16[32,128], index: 0, kind: input, shape index: {}]   ;;  %s342_s3 = inlined_call_operand.vmem [shape: bf16[32,128], index: 3, kind: output, shape index: {0}]   ;;  %s343_s4 = inlined_call_operand.vmem [shape: f32[8,128], index: 4, kind: output, shape index: {1}]  }
   0x1   :  { %v251_v0 = vld [vmem:[%s339_s1 + $0x38] sm:$0xff]  ;;  %v250_v1 = vld [vmem:[%s339_s1 + $0x30] sm:$0xff]  ;;  %v249_v2 = vld [vmem:[%s339_s1 + $0x28] sm:$0xff] }
   0x2   :  { %113 = vmatpush.bf16.msra.mxu0 %v251_v0  ;;  %263 = vmatpush.bf16.msra.mxu1 %v251_v0  ;;  %v248_v3 = vld [vmem:[%s339_s1 + $0x20] sm:$0xff]  ;;  %v247_v4 = vld [vmem:[%s339_s1 + $0x18] sm:$0xff]  ;;  %v246_v5 = vld [vmem:[%s339_s1 + $0x10] sm:$0xff]  ;;  %v178_v39 = vshrl.u32 %v177_v34, 7 }
   0x3   :  { %v245_v6 = vld [vmem:[%s339_s1 + $0x8] sm:$0xff]  ;;  %v244_v7 = vld [vmem:[%s339_s1] sm:$0xff] }
   0x4   :  { %v242_v8 = vld [vmem:[%s341_s0] sm:$0xff]  ;;  %v243_v9 = vld [vmem:[%s341_s0 + $0x8] sm:$0xff]  ;;  %vm180_vm0 = vcmp.eq.s32.totalorder %v178_v39, 1  ;;  %vm179_vm1 = vcmp.eq.s32.totalorder %v178_v39, 0 }
   0x5   :  { %v271_v12 = vld [vmem:[%s340_s2] ss:$0 sm:$0xff] }
   0x6   :  { %114 = vmatpush.bf16.msra.mxu0 %v250_v1  ;;  %264 = vmatpush.bf16.msra.mxu1 %v250_v1 }
   0xa   :  { %115 = vmatpush.bf16.msra.mxu0 %v249_v2  ;;  %265 = vmatpush.bf16.msra.mxu1 %v249_v2 }
   0xe   :  { %116 = vmatpush.bf16.msra.mxu0 %v248_v3  ;;  %266 = vmatpush.bf16.msra.mxu1 %v248_v3 }
  0x12   :  { %117 = vmatpush.bf16.msra.mxu0 %v247_v4  ;;  %267 = vmatpush.bf16.msra.mxu1 %v247_v4 }
  0x16   :  { %118 = vmatpush.bf16.msra.mxu0 %v246_v5  ;;  %268 = vmatpush.bf16.msra.mxu1 %v246_v5 }
  0x1a   :  { %119 = vmatpush.bf16.msra.mxu0 %v245_v6  ;;  %269 = vmatpush.bf16.msra.mxu1 %v245_v6 }
  0x1e   :  { %120 = vmatpush.bf16.msra.mxu0 %v244_v7  ;;  %270 = vmatpush.bf16.msra.mxu1 %v244_v7 }
  0x21   :  { %121 = vmatmul.bf16.vlgmr.msra.gmra.mxu0 %v242_v8  ;;  %126 = vmatmul.bf16.vlgmr.msra.gmra.mxu1 %v243_v9 }
  0x9e   :  { %v122_v10 = vpop.f32.mrf.mxu0  ;;  %v127_v11 = vpop.f32.mrf.mxu1 }
  0x9f   :  { %v151_v13 = vadd.f32 %v271_v12, %v122_v10  ;;  %v153_v16 = vadd.f32 %v271_v12, %v127_v11 }
  0xa1   :  { %v164_v19 = vmul.f32 %v151_v13, %v151_v13  ;;  %v166_v24 = vmul.f32 %v153_v16, %v153_v16 }
  0xa6   :  { %v124_v14 = vpop.f32.mrf.mxu0  ;;  %v129_v15 = vpop.f32.mrf.mxu1 }
  0xa7   :  { %v152_v17 = vadd.f32 %v271_v12, %v124_v14  ;;  %v154_v18 = vadd.f32 %v271_v12, %v129_v15 }
  0xa9   :  { %v155_v20 = vadd.f32 %v152_v17, %v151_v13  ;;  %v165_v21 = vmul.f32 %v152_v17, %v152_v17  ;;  %v255_v22 = vpack.c.bf16 %v152_v17, %v151_v13  ;;  %v260_v23 = vpack.c.bf16 %v154_v18, %v153_v16 }
  0xaa   :  { %v167_v28 = vmul.f32 %v154_v18, %v154_v18 }
  0xab   :  { %v168_v25 = vadd.f32 %v165_v21, %v164_v19  ;;  %256 = vst [vmem:[%s342_s3] sm:$0xff] %v255_v22   ;;  %v156_v26 = vadd.f32 %v155_v20, %v153_v16 }
  0xac   :  { %262 = vst [vmem:[%s342_s3 + $0x8] sm:$0xff] %v260_v23  }
  0xad   :  { %v157_v27 = vadd.f32 %v156_v26, %v154_v18  ;;  %v169_v29 = vadd.f32 %v168_v25, %v166_v24 }
  0xaf   :  { %v158_v30 = vrot.slane %v157_v27, 4  ;;  %v170_v31 = vadd.f32 %v169_v29, %v167_v28 }
  0xb1   :  { %v159_v32 = vadd.f32 %v158_v30, %v157_v27  ;;  %v171_v33 = vrot.slane %v170_v31, 4 }
  0xb3   :  { %v160_v35 = vrot.slane %v159_v32, 2  ;;  %v172_v36 = vadd.f32 %v171_v33, %v170_v31 }
  0xb5   :  { %v161_v37 = vadd.f32 %v160_v35, %v159_v32  ;;  %v173_v38 = vrot.slane %v172_v36, 2 }
  0xb7   :  { %v174_v40 = vadd.f32 %v173_v38, %v172_v36  ;;  %v162_v41 = vrot.slane %v161_v37, 1 }
  0xb9   :  { %v175_v42 = vrot.slane %v174_v40, 1  ;;  %v163_v44 = vadd.f32 %v162_v41, %v161_v37 }
  0xbb   :  { %v176_v43 = vadd.f32 %v175_v42, %v174_v40 }
  0xbd   :  { %v181_v45 = vsel %vm180_vm0, %v176_v43, 0.0 }
  0xbe   :  { %v182_v46 = vsel %vm179_vm1, %v163_v44, %v181_v45 }
  0xbf   :  { %183 = vst [vmem:[%s343_s4] sm:$0xff] %v182_v46 }

// kernel: _lambda_.38
= control target key start
LH: loop header
LB: loop body
LE: loop exit
PB: predicated region body
PF: predicated region fallthrough
CT: control target
= control target key end

     0   :  { %s112_s0 = inlined_call_operand.vmem [shape: bf16[16,128], index: 0, kind: input, shape index: {}]   ;;  %s113_s1 = inlined_call_operand.vmem [shape: f32[1,128], index: 1, kind: input, shape index: {}]   ;;  %s114_s2 = inlined_call_operand.vmem [shape: f32[1,128], index: 2, kind: input, shape index: {}]   ;;  %s115_s3 = inlined_call_operand.vmem [shape: bf16[16,128], index: 3, kind: output, shape index: {0}]   ;;  %s116_s4 = inlined_call_operand.vmem [shape: bf16[16,128], index: 4, kind: output, shape index: {1}]  }
   0x1   :  { %v57_v0 = vld [vmem:[%s112_s0] sm:$0xff]  }
   0x2   :  { %v70_v1 = vld [vmem:[%s113_s1] ss:$0 sm:$0xff]  ;;  %v58_v2 = vunpack.c.l.bf16 %v57_v0  ;;  %v59_v3 = vunpack.c.h.bf16 %v57_v0 }
   0x3   :  { %v71_v4 = vld [vmem:[%s114_s2] ss:$0 sm:$0xff] }
   0x4   :  { %v24_v5 = vmul.f32 %v70_v1, %v58_v2  ;;  %v25_v6 = vmul.f32 %v70_v1, %v59_v3 }
   0x6   :  { %v30_v7 = vadd.f32 %v71_v4, %v24_v5  ;;  %v31_v8 = vadd.f32 %v71_v4, %v25_v6 }
   0x8   :  { %vm32_vm0 = vcmp.gt.f32.partialorder %v30_v7, 0.0  ;;  %vm33_vm1 = vcmp.gt.f32.partialorder %v31_v8, 0.0  ;;  %v34_v9 = vmul.f32 0.2, %v30_v7  ;;  %v35_v10 = vmul.f32 0.2, %v31_v8 }
   0x9   :  { %v42_v11 = vmax.f32 %v30_v7, 0.0  ;;  %v43_v12 = vmax.f32 %v31_v8, 0.0 }
   0xa   :  { %v36_v13 = vsel %vm32_vm0, %v30_v7, %v34_v9  ;;  %v37_v14 = vsel %vm33_vm1, %v31_v8, %v35_v10 }
   0xb   :  { %v63_v15 = vpack.c.bf16 %v37_v14, %v36_v13  ;;  %v68_v16 = vpack.c.bf16 %v43_v12, %v42_v11 }
   0xd   :  { %64 = vst [vmem:[%s115_s3] sm:$0xff] %v63_v15  }
   0xe   :  { %69 = vst [vmem:[%s116_s4] sm:$0xff] %v68_v16  }

// kernel: _lambda_.37
= control target key start
LH: loop header
LB: loop body
LE: loop exit
PB: predicated region body
PF: predicated region fallthrough
CT: control target
= control target key end

     0   :  { %v228_v39 = vlaneseq  ;;  %s439_s1 = inlined_call_operand.vmem [shape: bf16[256,128], index: 1, kind: input, shape index: {}]   ;;  %s440_s0 = inlined_call_operand.vmem [shape: bf16[16,256], index: 0, kind: input, shape index: {}]   ;;  %s441_s2 = inlined_call_operand.vmem [shape: f32[1,128], index: 2, kind: input, shape index: {}]   ;;  %s442_s3 = inlined_call_operand.vmem [shape: bf16[16,128], index: 3, kind: output, shape index: {0}]   ;;  %s443_s4 = inlined_call_operand.vmem [shape: f32[8,128], index: 4, kind: output, shape index: {1}]  }
   0x1   :  { %v330_v0 = vld [vmem:[%s439_s1 + $0x38] sm:$0xff]  ;;  %v329_v2 = vld [vmem:[%s439_s1 + $0x30] sm:$0xff]  ;;  %v328_v4 = vld [vmem:[%s439_s1 + $0x28] sm:$0xff] }
   0x2   :  { %v338_v1 = vld [vmem:[%s439_s1 + $0x78] sm:$0xff]  ;;  %169 = vmatpush.bf16.msra.mxu0 %v330_v0  ;;  %v337_v3 = vld [vmem:[%s439_s1 + $0x70] sm:$0xff]  ;;  %v336_v5 = vld [vmem:[%s439_s1 + $0x68] sm:$0xff]  ;;  %v229_v44 = vshrl.u32 %v228_v39, 7 }
   0x3   :  { %183 = vmatpush.bf16.msra.mxu1 %v338_v1  ;;  %v327_v6 = vld [vmem:[%s439_s1 + $0x20] sm:$0xff]  ;;  %v326_v8 = vld [vmem:[%s439_s1 + $0x18] sm:$0xff]  ;;  %v325_v10 = vld [vmem:[%s439_s1 + $0x10] sm:$0xff] }
   0x4   :  { %v335_v7 = vld [vmem:[%s439_s1 + $0x60] sm:$0xff]  ;;  %v334_v9 = vld [vmem:[%s439_s1 + $0x58] sm:$0xff]  ;;  %v333_v11 = vld [vmem:[%s439_s1 + $0x50] sm:$0xff]  ;;  %vm231_vm0 = vcmp.eq.s32.totalorder %v229_v44, 1  ;;  %vm230_vm1 = vcmp.eq.s32.totalorder %v229_v44, 0 }
   0x5   :  { %v324_v12 = vld [vmem:[%s439_s1 + $0x8] sm:$0xff]  ;;  %v323_v14 = vld [vmem:[%s439_s1] sm:$0xff] }
   0x6   :  { %170 = vmatpush.bf16.msra.mxu0 %v329_v2  ;;  %v332_v13 = vld [vmem:[%s439_s1 + $0x48] sm:$0xff]  ;;  %v331_v15 = vld [vmem:[%s439_s1 + $0x40] sm:$0xff] }
   0x7   :  { %184 = vmatpush.bf16.msra.mxu1 %v337_v3  ;;  %v251_v16 = vld [vmem:[%s440_s0] sm:$0xf]  ;;  %v322_v17 = vld [vmem:[%s440_s0 + $0x4] sm:$0xf0]  ;;  %v321_v18 = vld [vmem:[%s440_s0 + $0x4] sm:$0xf] }
   0x8   :  { %v253_v19 = vld [vmem:[%s440_s0 + $0x8] sm:$0xf0]  ;;  %v252_v20 = vor.u32 %v322_v17, %v251_v16  ;;  %v344_v25 = vld [vmem:[%s441_s2] ss:$0 sm:$0xff] }
   0x9   :  { %v256_v21 = vor.u32 %v321_v18, %v253_v19 }
   0xa   :  { %171 = vmatpush.bf16.msra.mxu0 %v328_v4 }
   0xb   :  { %185 = vmatpush.bf16.msra.mxu1 %v336_v5 }
   0xe   :  { %172 = vmatpush.bf16.msra.mxu0 %v327_v6 }
   0xf   :  { %186 = vmatpush.bf16.msra.mxu1 %v335_v7 }
  0x12   :  { %173 = vmatpush.bf16.msra.mxu0 %v326_v8 }
  0x13   :  { %187 = vmatpush.bf16.msra.mxu1 %v334_v9 }
  0x16   :  { %174 = vmatpush.bf16.msra.mxu0 %v325_v10 }
  0x17   :  { %188 = vmatpush.bf16.msra.mxu1 %v333_v11 }
  0x1a   :  { %175 = vmatpush.bf16.msra.mxu0 %v324_v12 }
  0x1b   :  { %189 = vmatpush.bf16.msra.mxu1 %v332_v13 }
  0x1e   :  { %176 = vmatpush.bf16.msra.mxu0 %v323_v14 }
  0x1f   :  { %190 = vmatpush.bf16.msra.mxu1 %v331_v15 }
  0x21   :  { %177 = vmatmul.bf16.vlgmr.msra.gmra.mxu0 %v252_v20 }
  0x22   :  { %191 = vmatmul.bf16.vlgmr.msra.gmra.mxu1 %v256_v21 }
  0x9e   :  { %v178_v22 = vpop.f32.mrf.mxu0 }
  0x9f   :  { %v192_v23 = vpop.f32.mrf.mxu1 }
  0xa0   :  { %v193_v24 = vadd.f32 %v192_v23, %v178_v22 }
  0xa2   :  { %v210_v28 = vadd.f32 %v344_v25, %v193_v24 }
  0xa4   :  { %v219_v31 = vmul.f32 %v210_v28, %v210_v28 }
  0xa6   :  { %v180_v26 = vpop.f32.mrf.mxu0 }
  0xa7   :  { %v194_v27 = vpop.f32.mrf.mxu1 }
  0xa8   :  { %v195_v29 = vadd.f32 %v194_v27, %v180_v26 }
  0xaa   :  { %v211_v30 = vadd.f32 %v344_v25, %v195_v29 }
  0xac   :  { %v212_v32 = vadd.f32 %v211_v30, %v210_v28  ;;  %v220_v33 = vmul.f32 %v211_v30, %v211_v30  ;;  %v342_v34 = vpack.c.bf16 %v211_v30, %v210_v28 }
  0xae   :  { %v213_v35 = vrot.slane %v212_v32, 4  ;;  %v221_v36 = vadd.f32 %v220_v33, %v219_v31  ;;  %343 = vst [vmem:[%s442_s3] sm:$0xff] %v342_v34  }
  0xb0   :  { %v214_v37 = vadd.f32 %v213_v35, %v212_v32  ;;  %v222_v38 = vrot.slane %v221_v36, 4 }
  0xb2   :  { %v215_v40 = vrot.slane %v214_v37, 2  ;;  %v223_v41 = vadd.f32 %v222_v38, %v221_v36 }
  0xb4   :  { %v216_v42 = vadd.f32 %v215_v40, %v214_v37  ;;  %v224_v43 = vrot.slane %v223_v41, 2 }
  0xb6   :  { %v225_v45 = vadd.f32 %v224_v43, %v223_v41  ;;  %v217_v46 = vrot.slane %v216_v42, 1 }
  0xb8   :  { %v226_v47 = vrot.slane %v225_v45, 1  ;;  %v218_v49 = vadd.f32 %v217_v46, %v216_v42 }
  0xba   :  { %v227_v48 = vadd.f32 %v226_v47, %v225_v45 }
  0xbc   :  { %v232_v50 = vsel %vm231_vm0, %v227_v48, 0.0 }
  0xbd   :  { %v233_v51 = vsel %vm230_vm1, %v218_v49, %v232_v50 }
  0xbe   :  { %234 = vst [vmem:[%s443_s4] sm:$0xff] %v233_v51 }

// kernel: _lambda_.39
= control target key start
LH: loop header
LB: loop body
LE: loop exit
PB: predicated region body
PF: predicated region fallthrough
CT: control target
= control target key end

     0   :  { %s722_s1 = inlined_call_operand.vmem [shape: bf16[512,128], index: 1, kind: input, shape index: {}]   ;;  %s723_s0 = inlined_call_operand.vmem [shape: bf16[16,512], index: 0, kind: input, shape index: {}]   ;;  %s724_s2 = inlined_call_operand.vmem [shape: f32[1,128], index: 2, kind: input, shape index: {}]   ;;  %s725_s3 = inlined_call_operand.vmem [shape: bf16[16,128], index: 3, kind: output, shape index: {}]  }
   0x1   :  { %v545_v0 = vld [vmem:[%s722_s1 + $0x38] sm:$0xff]  ;;  %v544_v4 = vld [vmem:[%s722_s1 + $0x30] sm:$0xff]  ;;  %v543_v8 = vld [vmem:[%s722_s1 + $0x28] sm:$0xff] }
   0x2   :  { %v553_v1 = vld [vmem:[%s722_s1 + $0x78] sm:$0xff]  ;;  %307 = vmatpush.bf16.msra.mxu0 %v545_v0  ;;  %v552_v5 = vld [vmem:[%s722_s1 + $0x70] sm:$0xff]  ;;  %v551_v9 = vld [vmem:[%s722_s1 + $0x68] sm:$0xff] }
   0x3   :  { %v561_v2 = vld [vmem:[%s722_s1 + $0xb8] sm:$0xff]  ;;  %321 = vmatpush.bf16.msra.mxu1 %v553_v1  ;;  %v560_v6 = vld [vmem:[%s722_s1 + $0xb0] sm:$0xff]  ;;  %v559_v10 = vld [vmem:[%s722_s1 + $0xa8] sm:$0xff] }
   0x4   :  { %v569_v3 = vld [vmem:[%s722_s1 + $0xf8] sm:$0xff]  ;;  %335 = vmatpush.bf16.msra.mxu2 %v561_v2  ;;  %v568_v7 = vld [vmem:[%s722_s1 + $0xf0] sm:$0xff]  ;;  %v567_v11 = vld [vmem:[%s722_s1 + $0xe8] sm:$0xff] }
   0x5   :  { %349 = vmatpush.bf16.msra.mxu3 %v569_v3  ;;  %v542_v12 = vld [vmem:[%s722_s1 + $0x20] sm:$0xff]  ;;  %v541_v16 = vld [vmem:[%s722_s1 + $0x18] sm:$0xff]  ;;  %v540_v20 = vld [vmem:[%s722_s1 + $0x10] sm:$0xff] }
   0x6   :  { %308 = vmatpush.bf16.msra.mxu0 %v544_v4  ;;  %v550_v13 = vld [vmem:[%s722_s1 + $0x60] sm:$0xff]  ;;  %v549_v17 = vld [vmem:[%s722_s1 + $0x58] sm:$0xff]  ;;  %v548_v21 = vld [vmem:[%s722_s1 + $0x50] sm:$0xff] }
   0x7   :  { %322 = vmatpush.bf16.msra.mxu1 %v552_v5  ;;  %v558_v14 = vld [vmem:[%s722_s1 + $0xa0] sm:$0xff]  ;;  %v557_v18 = vld [vmem:[%s722_s1 + $0x98] sm:$0xff]  ;;  %v556_v22 = vld [vmem:[%s722_s1 + $0x90] sm:$0xff] }
   0x8   :  { %336 = vmatpush.bf16.msra.mxu2 %v560_v6  ;;  %v566_v15 = vld [vmem:[%s722_s1 + $0xe0] sm:$0xff]  ;;  %v565_v19 = vld [vmem:[%s722_s1 + $0xd8] sm:$0xff]  ;;  %v564_v23 = vld [vmem:[%s722_s1 + $0xd0] sm:$0xff] }
   0x9   :  { %350 = vmatpush.bf16.msra.mxu3 %v568_v7  ;;  %v539_v24 = vld [vmem:[%s722_s1 + $0x8] sm:$0xff]  ;;  %v538_v28 = vld [vmem:[%s722_s1] sm:$0xff]  ;;  %v536_v33 = vld [vmem:[%s723_s0 + $0xc] sm:$0xf0] }
   0xa   :  { %309 = vmatpush.bf16.msra.mxu0 %v543_v8  ;;  %v547_v25 = vld [vmem:[%s722_s1 + $0x48] sm:$0xff]  ;;  %v546_v29 = vld [vmem:[%s722_s1 + $0x40] sm:$0xff]  ;;  %v394_v35 = vld [vmem:[%s723_s0 + $0x10] sm:$0xf0] }
   0xb   :  { %323 = vmatpush.bf16.msra.mxu1 %v551_v9  ;;  %v555_v26 = vld [vmem:[%s722_s1 + $0x88] sm:$0xff]  ;;  %v554_v30 = vld [vmem:[%s722_s1 + $0x80] sm:$0xff]  ;;  %v537_v37 = vld [vmem:[%s723_s0 + $0x14] sm:$0xf0] }
   0xc   :  { %337 = vmatpush.bf16.msra.mxu2 %v559_v10  ;;  %v563_v27 = vld [vmem:[%s722_s1 + $0xc8] sm:$0xff]  ;;  %v562_v31 = vld [vmem:[%s722_s1 + $0xc0] sm:$0xff]  ;;  %v402_v39 = vld [vmem:[%s723_s0 + $0x18] sm:$0xf0] }
   0xd   :  { %351 = vmatpush.bf16.msra.mxu3 %v567_v11  ;;  %v392_v32 = vld [vmem:[%s723_s0] sm:$0xf]  ;;  %v534_v34 = vld [vmem:[%s723_s0 + $0x4] sm:$0xf]  ;;  %v400_v36 = vld [vmem:[%s723_s0 + $0x8] sm:$0xf] }
   0xe   :  { %310 = vmatpush.bf16.msra.mxu0 %v542_v12  ;;  %v535_v38 = vld [vmem:[%s723_s0 + $0xc] sm:$0xf]  ;;  %v393_v40 = vor.u32 %v536_v33, %v392_v32  ;;  %v397_v41 = vor.u32 %v534_v34, %v394_v35  ;;  %v401_v42 = vor.u32 %v537_v37, %v400_v36  ;;  %v575_v53 = vld [vmem:[%s724_s2] ss:$0 sm:$0xff] }
   0xf   :  { %324 = vmatpush.bf16.msra.mxu1 %v550_v13  ;;  %v405_v43 = vor.u32 %v535_v38, %v402_v39 }
  0x10   :  { %338 = vmatpush.bf16.msra.mxu2 %v558_v14 }
  0x11   :  { %352 = vmatpush.bf16.msra.mxu3 %v566_v15 }
  0x12   :  { %311 = vmatpush.bf16.msra.mxu0 %v541_v16 }
  0x13   :  { %325 = vmatpush.bf16.msra.mxu1 %v549_v17 }
  0x14   :  { %339 = vmatpush.bf16.msra.mxu2 %v557_v18 }
  0x15   :  { %353 = vmatpush.bf16.msra.mxu3 %v565_v19 }
  0x16   :  { %312 = vmatpush.bf16.msra.mxu0 %v540_v20 }
  0x17   :  { %326 = vmatpush.bf16.msra.mxu1 %v548_v21 }
  0x18   :  { %340 = vmatpush.bf16.msra.mxu2 %v556_v22 }
  0x19   :  { %354 = vmatpush.bf16.msra.mxu3 %v564_v23 }
  0x1a   :  { %313 = vmatpush.bf16.msra.mxu0 %v539_v24 }
  0x1b   :  { %327 = vmatpush.bf16.msra.mxu1 %v547_v25 }
  0x1c   :  { %341 = vmatpush.bf16.msra.mxu2 %v555_v26 }
  0x1d   :  { %355 = vmatpush.bf16.msra.mxu3 %v563_v27 }
  0x1e   :  { %314 = vmatpush.bf16.msra.mxu0 %v538_v28 }
  0x1f   :  { %328 = vmatpush.bf16.msra.mxu1 %v546_v29 }
  0x20   :  { %342 = vmatpush.bf16.msra.mxu2 %v554_v30 }
  0x21   :  { %356 = vmatpush.bf16.msra.mxu3 %v562_v31  ;;  %315 = vmatmul.bf16.vlgmr.msra.gmra.mxu0 %v393_v40 }
  0x22   :  { %329 = vmatmul.bf16.vlgmr.msra.gmra.mxu1 %v397_v41 }
  0x23   :  { %343 = vmatmul.bf16.vlgmr.msra.gmra.mxu2 %v401_v42 }
  0x24   :  { %357 = vmatmul.bf16.vlgmr.msra.gmra.mxu3 %v405_v43 }
  0x9e   :  { %v316_v44 = vpop.f32.mrf.mxu0 }
  0x9f   :  { %v330_v45 = vpop.f32.mrf.mxu1 }
  0xa0   :  { %v331_v46 = vadd.f32 %v330_v45, %v316_v44 }
  0xa6   :  { %v344_v47 = vpop.f32.mrf.mxu2  ;;  %v318_v50 = vpop.f32.mrf.mxu0 }
  0xa7   :  { %v358_v48 = vpop.f32.mrf.mxu3  ;;  %v345_v49 = vadd.f32 %v344_v47, %v331_v46  ;;  %v332_v51 = vpop.f32.mrf.mxu1 }
  0xa8   :  { %v333_v54 = vadd.f32 %v332_v51, %v318_v50 }
  0xa9   :  { %v359_v52 = vadd.f32 %v358_v48, %v345_v49 }
  0xab   :  { %v376_v58 = vadd.f32 %v575_v53, %v359_v52 }
  0xad   :  { %v378_v61 = vmax.f32 %v376_v58, 0.0 }
  0xae   :  { %v346_v55 = vpop.f32.mrf.mxu2 }
  0xaf   :  { %v347_v56 = vadd.f32 %v346_v55, %v333_v54  ;;  %v360_v57 = vpop.f32.mrf.mxu3 }
  0xb1   :  { %v361_v59 = vadd.f32 %v360_v57, %v347_v56 }
  0xb3   :  { %v377_v60 = vadd.f32 %v575_v53, %v361_v59 }
  0xb5   :  { %v379_v62 = vmax.f32 %v377_v60, 0.0 }
  0xb7   :  { %v573_v63 = vpack.c.bf16 %v379_v62, %v378_v61 }
  0xb9   :  { %574 = vst [vmem:[%s725_s3] sm:$0xff] %v573_v63  }

// kernel: _lambda_.47
= control target key start
LH: loop header
LB: loop body
LE: loop exit
PB: predicated region body
PF: predicated region fallthrough
CT: control target
= control target key end

     0   :  { %s83_s0 = inlined_call_operand.vmem [shape: bf16[16,128], index: 0, kind: input, shape index: {}]   ;;  %s84_s1 = inlined_call_operand.vmem [shape: f32[1,128], index: 1, kind: input, shape index: {}]   ;;  %s85_s2 = inlined_call_operand.vmem [shape: f32[1,128], index: 2, kind: input, shape index: {}]   ;;  %s86_s3 = inlined_call_operand.vmem [shape: bf16[16,128], index: 3, kind: output, shape index: {}]  }
   0x1   :  { %v41_v0 = vld [vmem:[%s83_s0] sm:$0xff]  }
   0x2   :  { %v49_v1 = vld [vmem:[%s84_s1] ss:$0 sm:$0xff]  ;;  %v42_v2 = vunpack.c.l.bf16 %v41_v0  ;;  %v43_v3 = vunpack.c.h.bf16 %v41_v0 }
   0x3   :  { %v50_v4 = vld [vmem:[%s85_s2] ss:$0 sm:$0xff] }
   0x4   :  { %v22_v5 = vmul.f32 %v49_v1, %v42_v2  ;;  %v23_v6 = vmul.f32 %v49_v1, %v43_v3 }
   0x6   :  { %v28_v7 = vadd.f32 %v50_v4, %v22_v5  ;;  %v29_v8 = vadd.f32 %v50_v4, %v23_v6 }
   0x8   :  { %v30_v9 = vmax.f32 %v28_v7, 0.0  ;;  %v31_v10 = vmax.f32 %v29_v8, 0.0 }
   0xa   :  { %v47_v11 = vpack.c.bf16 %v31_v10, %v30_v9 }
   0xc   :  { %48 = vst [vmem:[%s86_s3] sm:$0xff] %v47_v11  }

// kernel: _lambda_.41
= control target key start
LH: loop header
LB: loop body
LE: loop exit
PB: predicated region body
PF: predicated region fallthrough
CT: control target
= control target key end

     0   :  { %v146_v22 = vlaneseq  ;;  %s279_s1 = inlined_call_operand.vmem [shape: bf16[128,128], index: 1, kind: input, shape index: {}]   ;;  %s280_s2 = inlined_call_operand.vmem [shape: f32[1,128], index: 2, kind: input, shape index: {}]   ;;  %s281_s0 = inlined_call_operand.vmem [shape: bf16[16,128], index: 0, kind: input, shape index: {}]   ;;  %s282_s3 = inlined_call_operand.vmem [shape: bf16[16,128], index: 3, kind: output, shape index: {0}]   ;;  %s283_s4 = inlined_call_operand.vmem [shape: f32[8,128], index: 4, kind: output, shape index: {1}]  }
   0x1   :  { %v211_v0 = vld [vmem:[%s279_s1 + $0x38] sm:$0xff]  ;;  %v210_v1 = vld [vmem:[%s279_s1 + $0x30] sm:$0xff]  ;;  %v209_v2 = vld [vmem:[%s279_s1 + $0x28] sm:$0xff] }
   0x2   :  { %101 = vmatpush.bf16.msra.mxu0 %v211_v0  ;;  %v208_v3 = vld [vmem:[%s279_s1 + $0x20] sm:$0xff]  ;;  %v207_v4 = vld [vmem:[%s279_s1 + $0x18] sm:$0xff]  ;;  %v206_v5 = vld [vmem:[%s279_s1 + $0x10] sm:$0xff]  ;;  %v147_v27 = vshrl.u32 %v146_v22, 7 }
   0x3   :  { %v205_v6 = vld [vmem:[%s279_s1 + $0x8] sm:$0xff]  ;;  %v204_v7 = vld [vmem:[%s279_s1] sm:$0xff] }
   0x4   :  { %v203_v8 = vld [vmem:[%s281_s0] sm:$0xff]  ;;  %vm149_vm0 = vcmp.eq.s32.totalorder %v147_v27, 1  ;;  %vm148_vm1 = vcmp.eq.s32.totalorder %v147_v27, 0 }
   0x5   :  { %v217_v10 = vld [vmem:[%s280_s2] ss:$0 sm:$0xff] }
   0x6   :  { %102 = vmatpush.bf16.msra.mxu0 %v210_v1 }
   0xa   :  { %103 = vmatpush.bf16.msra.mxu0 %v209_v2 }
   0xe   :  { %104 = vmatpush.bf16.msra.mxu0 %v208_v3 }
  0x12   :  { %105 = vmatpush.bf16.msra.mxu0 %v207_v4 }
  0x16   :  { %106 = vmatpush.bf16.msra.mxu0 %v206_v5 }
  0x1a   :  { %107 = vmatpush.bf16.msra.mxu0 %v205_v6 }
  0x1e   :  { %108 = vmatpush.bf16.msra.mxu0 %v204_v7 }
  0x21   :  { %109 = vmatmul.bf16.vlgmr.msra.gmra.mxu0 %v203_v8 }
  0x9e   :  { %v110_v9 = vpop.f32.mrf.mxu0 }
  0x9f   :  { %v128_v11 = vadd.f32 %v217_v10, %v110_v9 }
  0xa1   :  { %v137_v14 = vmul.f32 %v128_v11, %v128_v11 }
  0xa6   :  { %v112_v12 = vpop.f32.mrf.mxu0 }
  0xa7   :  { %v129_v13 = vadd.f32 %v217_v10, %v112_v12 }
  0xa9   :  { %v130_v15 = vadd.f32 %v129_v13, %v128_v11  ;;  %v138_v16 = vmul.f32 %v129_v13, %v129_v13  ;;  %v215_v17 = vpack.c.bf16 %v129_v13, %v128_v11 }
  0xab   :  { %v131_v18 = vrot.slane %v130_v15, 4  ;;  %v139_v19 = vadd.f32 %v138_v16, %v137_v14  ;;  %216 = vst [vmem:[%s282_s3] sm:$0xff] %v215_v17  }
  0xad   :  { %v132_v20 = vadd.f32 %v131_v18, %v130_v15  ;;  %v140_v21 = vrot.slane %v139_v19, 4 }
  0xaf   :  { %v133_v23 = vrot.slane %v132_v20, 2  ;;  %v141_v24 = vadd.f32 %v140_v21, %v139_v19 }
  0xb1   :  { %v134_v25 = vadd.f32 %v133_v23, %v132_v20  ;;  %v142_v26 = vrot.slane %v141_v24, 2 }
  0xb3   :  { %v143_v28 = vadd.f32 %v142_v26, %v141_v24  ;;  %v135_v29 = vrot.slane %v134_v25, 1 }
  0xb5   :  { %v144_v30 = vrot.slane %v143_v28, 1  ;;  %v136_v32 = vadd.f32 %v135_v29, %v134_v25 }
  0xb7   :  { %v145_v31 = vadd.f32 %v144_v30, %v143_v28 }
  0xb9   :  { %v150_v33 = vsel %vm149_vm0, %v145_v31, 0.0 }
  0xba   :  { %v151_v34 = vsel %vm148_vm1, %v136_v32, %v150_v33 }
  0xbb   :  { %152 = vst [vmem:[%s283_s4] sm:$0xff] %v151_v34 }

// kernel: _lambda_.63
= control target key start
LH: loop header
LB: loop body
LE: loop exit
PB: predicated region body
PF: predicated region fallthrough
CT: control target
= control target key end

     0   :  { %s114_s0 = inlined_call_operand.vmem [shape: bf16[32,128], index: 0, kind: input, shape index: {}]   ;;  %s115_s1 = inlined_call_operand.vmem [shape: f32[1,128], index: 1, kind: input, shape index: {}]   ;;  %s116_s2 = inlined_call_operand.vmem [shape: f32[1,128], index: 2, kind: input, shape index: {}]   ;;  %s117_s3 = inlined_call_operand.vmem [shape: bf16[32,128], index: 3, kind: output, shape index: {}]  }
   0x1   :  { %v55_v0 = vld [vmem:[%s114_s0] sm:$0xff]   ;;  %v72_v5 = vld [vmem:[%s114_s0 + $0x8] sm:$0xff]  }
   0x2   :  { %v74_v1 = vld [vmem:[%s115_s1] ss:$0 sm:$0xff]  ;;  %v56_v2 = vunpack.c.l.bf16 %v55_v0  ;;  %v57_v3 = vunpack.c.h.bf16 %v55_v0  ;;  %v60_v6 = vunpack.c.l.bf16 %v72_v5  ;;  %v61_v7 = vunpack.c.h.bf16 %v72_v5 }
   0x3   :  { %v75_v4 = vld [vmem:[%s116_s2] ss:$0 sm:$0xff] }
   0x4   :  { %v26_v8 = vmul.f32 %v74_v1, %v56_v2  ;;  %v27_v9 = vmul.f32 %v74_v1, %v57_v3  ;;  %v28_v10 = vmul.f32 %v74_v1, %v60_v6  ;;  %v29_v11 = vmul.f32 %v74_v1, %v61_v7 }
   0x6   :  { %v34_v12 = vadd.f32 %v75_v4, %v26_v8  ;;  %v35_v13 = vadd.f32 %v75_v4, %v27_v9  ;;  %v36_v14 = vadd.f32 %v75_v4, %v28_v10  ;;  %v37_v15 = vadd.f32 %v75_v4, %v29_v11 }
   0x8   :  { %v38_v16 = vmax.f32 %v34_v12, 0.0  ;;  %v39_v17 = vmax.f32 %v35_v13, 0.0  ;;  %v40_v18 = vmax.f32 %v36_v14, 0.0  ;;  %v41_v19 = vmax.f32 %v37_v15, 0.0 }
   0xa   :  { %v65_v20 = vpack.c.bf16 %v39_v17, %v38_v16  ;;  %v70_v21 = vpack.c.bf16 %v41_v19, %v40_v18 }
   0xc   :  { %66 = vst [vmem:[%s117_s3] sm:$0xff] %v65_v20  }
   0xd   :  { %73 = vst [vmem:[%s117_s3 + $0x8] sm:$0xff] %v70_v21  }

// kernel: _lambda_.64
= control target key start
LH: loop header
LB: loop body
LE: loop exit
PB: predicated region body
PF: predicated region fallthrough
CT: control target
= control target key end

     0   :  { %s615_s1 = inlined_call_operand.vmem [shape: bf16[128,128], index: 1, kind: input, shape index: {}]   ;;  %s616_s2 = inlined_call_operand.vmem [shape: f32[1,128], index: 2, kind: input, shape index: {}]   ;;  %s617_s0 = inlined_call_operand.vmem [shape: bf16[128,128], index: 0, kind: input, shape index: {}]   ;;  %s618_s3 = inlined_call_operand.vmem [shape: f32[128,128], index: 3, kind: output, shape index: {}]  }
   0x1   :  { %v420_v0 = vld [vmem:[%s615_s1 + $0x38] sm:$0xff]  ;;  %v419_v1 = vld [vmem:[%s615_s1 + $0x30] sm:$0xff]  ;;  %v418_v2 = vld [vmem:[%s615_s1 + $0x28] sm:$0xff] }
   0x2   :  { %183 = vmatpush.bf16.msra.mxu0 %v420_v0  ;;  %421 = vmatpush.bf16.msra.mxu1 %v420_v0  ;;  %v417_v3 = vld [vmem:[%s615_s1 + $0x20] sm:$0xff]  ;;  %v416_v4 = vld [vmem:[%s615_s1 + $0x18] sm:$0xff]  ;;  %v415_v5 = vld [vmem:[%s615_s1 + $0x10] sm:$0xff] }
   0x3   :  { %422 = vmatpush.bf16.msra.mxu2 %v420_v0  ;;  %423 = vmatpush.bf16.msra.mxu3 %v420_v0  ;;  %v414_v6 = vld [vmem:[%s615_s1 + $0x8] sm:$0xff]  ;;  %v413_v7 = vld [vmem:[%s615_s1] sm:$0xff]  ;;  %v407_v9 = vld [vmem:[%s617_s0 + $0x10] sm:$0xff] }
   0x4   :  { %v405_v8 = vld [vmem:[%s617_s0] sm:$0xff]  ;;  %v411_v11 = vld [vmem:[%s617_s0 + $0x30] sm:$0xff]  ;;  %v406_v12 = vld [vmem:[%s617_s0 + $0x8] sm:$0xff] }
   0x5   :  { %v409_v10 = vld [vmem:[%s617_s0 + $0x20] sm:$0xff]  ;;  %v408_v13 = vld [vmem:[%s617_s0 + $0x18] sm:$0xff]  ;;  %v410_v14 = vld [vmem:[%s617_s0 + $0x28] sm:$0xff] }
   0x6   :  { %184 = vmatpush.bf16.msra.mxu0 %v419_v1  ;;  %424 = vmatpush.bf16.msra.mxu1 %v419_v1  ;;  %v412_v15 = vld [vmem:[%s617_s0 + $0x38] sm:$0xff]  ;;  %v549_v16 = vld [vmem:[%s616_s2] ss:$0 sm:$0xff] }
   0x7   :  { %425 = vmatpush.bf16.msra.mxu2 %v419_v1  ;;  %426 = vmatpush.bf16.msra.mxu3 %v419_v1 }
   0xa   :  { %185 = vmatpush.bf16.msra.mxu0 %v418_v2  ;;  %427 = vmatpush.bf16.msra.mxu1 %v418_v2 }
   0xb   :  { %428 = vmatpush.bf16.msra.mxu2 %v418_v2  ;;  %429 = vmatpush.bf16.msra.mxu3 %v418_v2 }
   0xe   :  { %186 = vmatpush.bf16.msra.mxu0 %v417_v3  ;;  %430 = vmatpush.bf16.msra.mxu1 %v417_v3 }
   0xf   :  { %431 = vmatpush.bf16.msra.mxu2 %v417_v3  ;;  %432 = vmatpush.bf16.msra.mxu3 %v417_v3 }
  0x12   :  { %187 = vmatpush.bf16.msra.mxu0 %v416_v4  ;;  %433 = vmatpush.bf16.msra.mxu1 %v416_v4 }
  0x13   :  { %434 = vmatpush.bf16.msra.mxu2 %v416_v4  ;;  %435 = vmatpush.bf16.msra.mxu3 %v416_v4 }
  0x16   :  { %188 = vmatpush.bf16.msra.mxu0 %v415_v5  ;;  %436 = vmatpush.bf16.msra.mxu1 %v415_v5 }
  0x17   :  { %437 = vmatpush.bf16.msra.mxu2 %v415_v5  ;;  %438 = vmatpush.bf16.msra.mxu3 %v415_v5 }
  0x1a   :  { %189 = vmatpush.bf16.msra.mxu0 %v414_v6  ;;  %439 = vmatpush.bf16.msra.mxu1 %v414_v6 }
  0x1b   :  { %440 = vmatpush.bf16.msra.mxu2 %v414_v6  ;;  %441 = vmatpush.bf16.msra.mxu3 %v414_v6 }
  0x1e   :  { %190 = vmatpush.bf16.msra.mxu0 %v413_v7  ;;  %442 = vmatpush.bf16.msra.mxu1 %v413_v7 }
  0x1f   :  { %443 = vmatpush.bf16.msra.mxu2 %v413_v7  ;;  %444 = vmatpush.bf16.msra.mxu3 %v413_v7 }
  0x21   :  { %191 = vmatmul.bf16.vlgmr.msra.gmra.mxu0 %v405_v8  ;;  %201 = vmatmul.bf16.vlgmr.msra.gmra.mxu1 %v407_v9 }
  0x22   :  { %211 = vmatmul.bf16.vlgmr.msra.gmra.mxu2 %v409_v10  ;;  %221 = vmatmul.bf16.vlgmr.msra.gmra.mxu3 %v411_v11 }
  0x31   :  { %196 = vmatmul.bf16.gmra.mxu0 %v406_v12  ;;  %206 = vmatmul.bf16.gmra.mxu1 %v408_v13 }
  0x32   :  { %216 = vmatmul.bf16.gmra.mxu2 %v410_v14  ;;  %226 = vmatmul.bf16.gmra.mxu3 %v412_v15 }
  0x9e   :  { %v192_v17 = vpop.f32.mrf.mxu0  ;;  %v202_v18 = vpop.f32.mrf.mxu1 }
  0x9f   :  { %v287_v19 = vadd.f32 %v549_v16, %v192_v17  ;;  %v291_v20 = vadd.f32 %v549_v16, %v202_v18 }
  0xa1   :  { %446 = vtanh.f32 %v287_v19 }
  0xa2   :  { %448 = vtanh.f32 %v291_v20 }
  0xa5   :  { %v212_v21 = vpop.f32.mrf.mxu2  ;;  %v222_v22 = vpop.f32.mrf.mxu3 }
  0xa6   :  { %v295_v23 = vadd.f32 %v549_v16, %v212_v21  ;;  %v299_v24 = vadd.f32 %v549_v16, %v222_v22  ;;  %v194_v25 = vpop.f32.mrf.mxu0  ;;  %v204_v26 = vpop.f32.mrf.mxu1 }
  0xa7   :  { %v447_v27 = vpop.eup %446  ;;  %v288_v28 = vadd.f32 %v549_v16, %v194_v25  ;;  %v292_v29 = vadd.f32 %v549_v16, %v204_v26 }
  0xa8   :  { %v449_v30 = vpop.eup %448  ;;  %319 = vst [vmem:[%s618_s3] sm:$0xff] %v447_v27  ;;  %450 = vtanh.f32 %v295_v23 }
  0xa9   :  { %323 = vst [vmem:[%s618_s3 + $0x20] sm:$0xff] %v449_v30  ;;  %452 = vtanh.f32 %v299_v24 }
  0xaa   :  { %454 = vtanh.f32 %v288_v28 }
  0xab   :  { %456 = vtanh.f32 %v292_v29 }
  0xad   :  { %v214_v31 = vpop.f32.mrf.mxu2  ;;  %v224_v32 = vpop.f32.mrf.mxu3 }
  0xae   :  { %v451_v33 = vpop.eup %450  ;;  %v296_v34 = vadd.f32 %v549_v16, %v214_v31  ;;  %v300_v35 = vadd.f32 %v549_v16, %v224_v32  ;;  %v197_v36 = vpop.f32.mrf.mxu0 }
  0xaf   :  { %v207_v37 = vpop.f32.mrf.mxu1  ;;  %v453_v38 = vpop.eup %452  ;;  %327 = vst [vmem:[%s618_s3 + $0x40] sm:$0xff] %v451_v33  ;;  %v289_v39 = vadd.f32 %v549_v16, %v197_v36 }
  0xb0   :  { %v293_v40 = vadd.f32 %v549_v16, %v207_v37  ;;  %v455_v41 = vpop.eup %454  ;;  %331 = vst [vmem:[%s618_s3 + $0x60] sm:$0xff] %v453_v38  ;;  %458 = vtanh.f32 %v296_v34 }
  0xb1   :  { %v457_v42 = vpop.eup %456  ;;  %320 = vst [vmem:[%s618_s3 + $0x8] sm:$0xff] %v455_v41  ;;  %460 = vtanh.f32 %v300_v35 }
  0xb2   :  { %324 = vst [vmem:[%s618_s3 + $0x28] sm:$0xff] %v457_v42  ;;  %462 = vtanh.f32 %v289_v39 }
  0xb3   :  { %464 = vtanh.f32 %v293_v40 }
  0xb5   :  { %v217_v43 = vpop.f32.mrf.mxu2  ;;  %v227_v44 = vpop.f32.mrf.mxu3 }
  0xb6   :  { %v459_v45 = vpop.eup %458  ;;  %v297_v46 = vadd.f32 %v549_v16, %v217_v43  ;;  %v301_v47 = vadd.f32 %v549_v16, %v227_v44  ;;  %v199_v48 = vpop.f32.mrf.mxu0 }
  0xb7   :  { %v209_v49 = vpop.f32.mrf.mxu1  ;;  %v461_v50 = vpop.eup %460  ;;  %328 = vst [vmem:[%s618_s3 + $0x48] sm:$0xff] %v459_v45  ;;  %v290_v51 = vadd.f32 %v549_v16, %v199_v48 }
  0xb8   :  { %v294_v52 = vadd.f32 %v549_v16, %v209_v49  ;;  %v463_v53 = vpop.eup %462  ;;  %332 = vst [vmem:[%s618_s3 + $0x68] sm:$0xff] %v461_v50  ;;  %466 = vtanh.f32 %v297_v46 }
  0xb9   :  { %v465_v54 = vpop.eup %464  ;;  %321 = vst [vmem:[%s618_s3 + $0x10] sm:$0xff] %v463_v53  ;;  %468 = vtanh.f32 %v301_v47 }
  0xba   :  { %325 = vst [vmem:[%s618_s3 + $0x30] sm:$0xff] %v465_v54  ;;  %470 = vtanh.f32 %v290_v51 }
  0xbb   :  { %472 = vtanh.f32 %v294_v52 }
  0xbd   :  { %v219_v55 = vpop.f32.mrf.mxu2  ;;  %v229_v56 = vpop.f32.mrf.mxu3 }
  0xbe   :  { %v467_v57 = vpop.eup %466  ;;  %v298_v58 = vadd.f32 %v549_v16, %v219_v55  ;;  %v302_v59 = vadd.f32 %v549_v16, %v229_v56 }
  0xbf   :  { %v469_v60 = vpop.eup %468  ;;  %329 = vst [vmem:[%s618_s3 + $0x50] sm:$0xff] %v467_v57 }
  0xc0   :  { %v471_v61 = vpop.eup %470  ;;  %333 = vst [vmem:[%s618_s3 + $0x70] sm:$0xff] %v469_v60  ;;  %474 = vtanh.f32 %v298_v58 }
  0xc1   :  { %v473_v62 = vpop.eup %472  ;;  %322 = vst [vmem:[%s618_s3 + $0x18] sm:$0xff] %v471_v61  ;;  %476 = vtanh.f32 %v302_v59 }
  0xc2   :  { %326 = vst [vmem:[%s618_s3 + $0x38] sm:$0xff] %v473_v62 }
  0xc6   :  { %v475_v63 = vpop.eup %474 }
  0xc7   :  { %v477_v0 = vpop.eup %476  ;;  %330 = vst [vmem:[%s618_s3 + $0x58] sm:$0xff] %v475_v63 }
  0xc8   :  { %334 = vst [vmem:[%s618_s3 + $0x78] sm:$0xff] %v477_v0 }

</bundles_post_ra>
